<compile_context>
chip_gen: v7x
topology: tpu7x:2x2x1
jax: 0.10.0
libtpu: 0.0.40
codegen_flags: <defaults>
</compile_context>

<pallas_src>
import numpy as np
import jax
import jax.numpy as jnp
from jax.experimental import pallas as pl
from jax.experimental.pallas import tpu as pltpu

LN_EPS = 1e-5


def _gelu_tanh(x):
    c = 0.7978845608028654  # sqrt(2/pi)
    return 0.5 * x * (1.0 + jnp.tanh(c * (x + 0.044715 * x * x * x)))


def _layer_norm(x, gamma, beta):
    mu = jnp.mean(x, axis=-1, keepdims=True)
    xc = x - mu
    var = jnp.mean(xc * xc, axis=-1, keepdims=True)
    return xc * jax.lax.rsqrt(var + LN_EPS) * gamma + beta


def dec_layer_kernel(hV_ref, hE_ref, mattn_ref, mV_ref,
                     w1v_ref, w1e_ref, b1_ref,
                     w2_ref, b2_ref,
                     w3_ref, b3_ref,
                     ln_ref,
                     win_ref, bin_ref,
                     wout_ref, bout_ref,
                     out_ref):
    f32 = jnp.float32
    bf16 = jnp.bfloat16
    T, K, C = hE_ref.shape
    H = hV_ref.shape[-1]

    h_V = hV_ref[...].astype(f32)                     # [T, H]
    m_attn = mattn_ref[...].astype(f32)               # [T, K, 1]
    m_V = mV_ref[...].astype(f32)                     # [T, 1]

    gamma0 = ln_ref[0:1, :]
    beta0 = ln_ref[1:2, :]
    gamma1 = ln_ref[2:3, :]
    beta1 = ln_ref[3:4, :]

    # ---- edge-message branch --------------------------------------------------
    h_LV = _layer_norm(h_V, gamma0, beta0)            # [T, H]  (f32 stats)
    # W1 split into node / edge halves; node half computed once per row.
    # bf16 operands, f32 MXU accumulation.
    pre_v = jnp.dot(h_LV.astype(bf16), w1v_ref[...],
                    preferred_element_type=f32) + b1_ref[...]          # [T, H]
    hE2 = hE_ref[...].reshape(T * K, C).astype(bf16)
    pre_e = jnp.dot(hE2, w1e_ref[...], preferred_element_type=f32)     # [T*K, H]
    x = _gelu_tanh(pre_e.reshape(T, K, H) + pre_v[:, None, :])         # [T, K, H]
    x = _gelu_tanh(jnp.dot(x.reshape(T * K, H).astype(bf16), w2_ref[...],
                           preferred_element_type=f32) + b2_ref[...])  # [T*K, H]

    # W3/b3 hoisted past the (linear) mask-multiply + K-sum:
    #   dh = (sum_K m*x) @ W3 + (sum_K m) * b3
    # W3 / b3 arrive pre-scaled by (resweight / scale) from the wrapper.
    xm = x.reshape(T, K, H) * m_attn                  # mask once, pre-W3
    s = jnp.sum(xm, axis=1)                           # [T, H]
    msum = jnp.sum(m_attn, axis=1)                    # [T, 1]  (# unmasked neighbors)
    dh = (jnp.dot(s.astype(bf16), w3_ref[...], preferred_element_type=f32)
          + msum * b3_ref[...])
    h_V1 = h_V + dh                                   # [T, H]

    # ---- position-wise feed-forward -------------------------------------------
    h_LV1 = _layer_norm(h_V1, gamma1, beta1)
    ff = _gelu_tanh(jnp.dot(h_LV1.astype(bf16), win_ref[...],
                            preferred_element_type=f32) + bin_ref[...])
    # W_out / b_out arrive pre-scaled by resweight from the wrapper.
    h_V2 = h_V1 + jnp.dot(ff.astype(bf16), wout_ref[...],
                          preferred_element_type=f32) + bout_ref[...]

    out_ref[...] = (m_V * h_V2).astype(out_ref.dtype)


def _round_up(x, m):
    return (x + m - 1) // m * m


def dec_layer_forward(params, h_V, h_E, mask_V=None, mask_attend=None,
                      *, scale=30.0, tile_n=256,
                      vmem_limit_bytes=48 * 1024 * 1024):
    """h_V: [B, L, H]; h_E: [B, L, K, C]; mask_V: [B, L]; mask_attend: [B, L, K]."""
    f32 = jnp.float32
    bf16 = jnp.bfloat16
    B, L, H = h_V.shape
    _, _, K, C = h_E.shape
    N = B * L

    if mask_V is None:
        mask_V = jnp.ones((B, L), f32)
    if mask_attend is None:
        mask_attend = jnp.ones((B, L, K), f32)

    rw = jnp.asarray(params["resweight"], f32).reshape(())

    # x @ W layouts; bf16 weights (f32 accumulation in-kernel); residual scalars
    # folded into the last matmul of each branch; biases/LN params kept in f32.
    w1 = params["W1"].astype(f32).T                              # [H + C, H]
    w1_v = w1[:H, :].astype(bf16)
    w1_e = w1[H:, :].astype(bf16)
    b1 = params["b1"].astype(f32).reshape(1, H)
    w2 = params["W2"].astype(f32).T.astype(bf16)
    b2 = params["b2"].astype(f32).reshape(1, H)
    w3 = (params["W3"].astype(f32).T * (rw / scale)).astype(bf16)
    b3 = params["b3"].astype(f32).reshape(1, H) * (rw / scale)
    ln = jnp.stack([params["ln0_gamma"], params["ln0_beta"],
                    params["ln1_gamma"], params["ln1_beta"]]).astype(f32)  # [4, H]
    w_in = params["W_in"].astype(f32).T.astype(bf16)             # [H, F]
    b_in = params["b_in"].astype(f32).reshape(1, -1)
    w_out = (params["W_out"].astype(f32).T * rw).astype(bf16)    # [F, H]
    b_out = params["b_out"].astype(f32).reshape(1, H) * rw
    F = w_in.shape[1]

    # Flatten (B, L) -> rows; keep native dtype (cast to bf16 in-kernel at the
    # matmuls).  Pad only when a ragged tail / non-multiple-of-8 K actually
    # exists (no gratuitous HBM copy).
    tile_n = max(8, min(tile_n, _round_up(N, 8)))
    n_pad = _round_up(N, tile_n)
    k_pad = _round_up(K, 8)

    hV_f = h_V.reshape(N, H)
    hE_f = h_E.reshape(N, K, C)
    ma_f = mask_attend.reshape(N, K).astype(f32)
    mv_f = mask_V.reshape(N, 1).astype(f32)
    if k_pad != K:
        hE_f = jnp.pad(hE_f, ((0, 0), (0, k_pad - K), (0, 0)))
        ma_f = jnp.pad(ma_f, ((0, 0), (0, k_pad - K)))   # padded neighbors masked off
    if n_pad != N:
        hV_f = jnp.pad(hV_f, ((0, n_pad - N), (0, 0)))
        hE_f = jnp.pad(hE_f, ((0, n_pad - N), (0, 0), (0, 0)))
        ma_f = jnp.pad(ma_f, ((0, n_pad - N), (0, 0)))
        mv_f = jnp.pad(mv_f, ((0, n_pad - N), (0, 0)))
    ma_f = ma_f.reshape(n_pad, k_pad, 1)

    grid = (n_pad // tile_n,)   # >= 2 steps preferred on v7x (2 TCs share the grid)
    const = lambda i: (0, 0)

    out_dtype = h_V.dtype
    in_item = jnp.dtype(h_V.dtype).itemsize
    e_item = jnp.dtype(h_E.dtype).itemsize
    flops_per_row = (2 * H * H                       # W1 node half (once per row)
                     + k_pad * (2 * C * H + 2 * H * H)  # W1 edge half + W2 per neighbor
                     + 2 * H * H                     # W3 (hoisted after K-sum)
                     + 4 * H * F)                    # W_in + W_out
    cost = pl.CostEstimate(
        flops=int(n_pad * flops_per_row),
        transcendentals=int(n_pad * (2 * k_pad * H + F)),
        bytes_accessed=int(
            n_pad * H * (in_item + jnp.dtype(out_dtype).itemsize)   # h_V in + out
            + n_pad * k_pad * C * e_item                            # h_E
            + 4 * n_pad * (k_pad + 1)                               # masks (f32)
            + 2 * (3 * H * H + C * H + 2 * H * F)                   # bf16 weights
            + 4 * (4 * H + 3 * H + F)),                             # LN + biases (f32)
    )

    out = pl.pallas_call(
        dec_layer_kernel,
        out_shape=jax.ShapeDtypeStruct((n_pad, H), out_dtype),
        grid_spec=pltpu.PrefetchScalarGridSpec(
            num_scalar_prefetch=0,
            grid=grid,
            in_specs=[
                pl.BlockSpec((tile_n, H), lambda i: (i, 0)),            # h_V
                pl.BlockSpec((tile_n, k_pad, C), lambda i: (i, 0, 0)),  # h_E
                pl.BlockSpec((tile_n, k_pad, 1), lambda i: (i, 0, 0)),  # mask_attend
                pl.BlockSpec((tile_n, 1), lambda i: (i, 0)),            # mask_V
                pl.BlockSpec((H, H), const),                            # W1 node half (bf16)
                pl.BlockSpec((C, H), const),                            # W1 edge half (bf16)
                pl.BlockSpec((1, H), const),                            # b1
                pl.BlockSpec((H, H), const),                            # W2 (bf16)
                pl.BlockSpec((1, H), const),                            # b2
                pl.BlockSpec((H, H), const),                            # W3 (bf16, scaled)
                pl.BlockSpec((1, H), const),                            # b3 (scaled)
                pl.BlockSpec((4, H), const),                            # LN params
                pl.BlockSpec((H, F), const),                            # W_in (bf16)
                pl.BlockSpec((1, F), const),                            # b_in
                pl.BlockSpec((F, H), const),                            # W_out (bf16, scaled)
                pl.BlockSpec((1, H), const),                            # b_out (scaled)
            ],
            out_specs=pl.BlockSpec((tile_n, H), lambda i: (i, 0)),
        ),
        compiler_params=pltpu.CompilerParams(
            dimension_semantics=("parallel",),
            vmem_limit_bytes=vmem_limit_bytes),
        cost_estimate=cost,
    )(hV_f, hE_f, ma_f, mv_f,
      w1_v, w1_e, b1, w2, b2, w3, b3, ln, w_in, b_in, w_out, b_out)

    return out[:N].reshape(B, L, H)


# ----------------------------- pure-JAX reference -----------------------------
def dec_layer_ref(params, h_V, h_E, mask_V=None, mask_attend=None, *, scale=30.0):
    f32 = jnp.float32
    hp = jax.lax.Precision.HIGHEST

    def ln(x, g, b):
        mu = jnp.mean(x, axis=-1, keepdims=True)
        xc = x - mu
        var = jnp.mean(xc * xc, axis=-1, keepdims=True)
        return xc * jax.lax.rsqrt(var + LN_EPS) * g.astype(f32) + b.astype(f32)

    def lin(x, W, b):
        return jnp.dot(x, W.T.astype(f32), precision=hp) + b.astype(f32)

    h_V = h_V.astype(f32)
    h_E = h_E.astype(f32)
    rw = jnp.asarray(params["resweight"], f32)

    h_LV = ln(h_V, params["ln0_gamma"], params["ln0_beta"])
    h_V_expand = jnp.broadcast_to(h_LV[..., None, :],
                                  h_E.shape[:-1] + (h_LV.shape[-1],))
    h_EV = jnp.concatenate([h_V_expand, h_E], axis=-1)
    h = _gelu_tanh(lin(h_EV, params["W1"], params["b1"]))
    h = _gelu_tanh(lin(h, params["W2"], params["b2"]))
    h_message = lin(h, params["W3"], params["b3"])
    if mask_attend is not None:
        h_message = mask_attend[..., None].astype(f32) * h_message
    dh = jnp.sum(h_message, axis=-2) / scale
    h_V = h_V + dh * rw
    h_LV = ln(h_V, params["ln1_gamma"], params["ln1_beta"])
    dh = lin(_gelu_tanh(lin(h_LV, params["W_in"], params["b_in"])),
             params["W_out"], params["b_out"])
    h_V = h_V + dh * rw
    if mask_V is not None:
        h_V = mask_V[..., None].astype(f32) * h_V
    return h_V


if __name__ == "__main__":
    B, L, K = 2, 8, 8          # batch, sequence, neighbors
    H = 32                     # num_hidden
    C = 32                     # num_in (edge feature width)

    key = jax.random.PRNGKey(0)
    ks = jax.random.split(key, 18)

    def lin_init(kw, kb, out_d, in_d):
        bound = 1.0 / np.sqrt(in_d)
        W = jax.random.uniform(kw, (out_d, in_d), minval=-bound, maxval=bound,
                               dtype=jnp.float32)
        b = jax.random.uniform(kb, (out_d,), minval=-bound, maxval=bound,
                               dtype=jnp.float32)
        return W, b

    W1, b1 = lin_init(ks[0], ks[1], H, H + C)
    W2, b2 = lin_init(ks[2], ks[3], H, H)
    W3, b3 = lin_init(ks[4], ks[5], H, H)
    W_in, b_in = lin_init(ks[6], ks[7], 4 * H, H)
    W_out, b_out = lin_init(ks[8], ks[9], H, 4 * H)

    params = dict(
        W1=W1, b1=b1, W2=W2, b2=b2, W3=W3, b3=b3,
        W_in=W_in, b_in=b_in, W_out=W_out, b_out=b_out,
        ln0_gamma=1.0 + 0.1 * jax.random.normal(ks[10], (H,), jnp.float32),
        ln0_beta=0.1 * jax.random.normal(ks[11], (H,), jnp.float32),
        ln1_gamma=1.0 + 0.1 * jax.random.normal(ks[12], (H,), jnp.float32),
        ln1_beta=0.1 * jax.random.normal(ks[13], (H,), jnp.float32),
        resweight=jnp.float32(0.7),   # nonzero so both residual branches are exercised
    )

    h_V = jax.random.normal(ks[14], (B, L, H), jnp.float32)
    h_E = jax.random.normal(ks[15], (B, L, K, C), jnp.float32)
    mask_V = jax.random.bernoulli(ks[16], 0.9, (B, L)).astype(jnp.float32)
    mask_attend = jax.random.bernoulli(ks[17], 0.8, (B, L, K)).astype(jnp.float32)

    # tile_n=8 -> 2 grid steps even at this tiny demo size (exercises the pipeline).
    out = dec_layer_forward(params, h_V, h_E, mask_V, mask_attend,
                            scale=30.0, tile_n=8)
    out = jax.block_until_ready(out)

    ref = jax.block_until_ready(
        dec_layer_ref(params, h_V, h_E, mask_V, mask_attend, scale=30.0))
    # bf16 matmuls (f32 accumulation) vs f32 reference -> tolerance ~1e-2.
    np.testing.assert_allclose(np.asarray(out), np.asarray(ref),
                               rtol=3e-2, atol=3e-2)
    print("KERNEL_OK")
</pallas_src>

<mosaic_0001>
module attributes {stable_mosaic.version = 11 : i64} {
  func.func @dec_layer_kernel(%arg0: i32, %arg1: memref<8x32xf32, #tpu.memory_space<vmem>>, %arg2: memref<8x8x32xf32, #tpu.memory_space<vmem>>, %arg3: memref<8x8x1xf32, #tpu.memory_space<vmem>>, %arg4: memref<8x1xf32, #tpu.memory_space<vmem>>, %arg5: memref<32x32xbf16, #tpu.memory_space<vmem>>, %arg6: memref<32x32xbf16, #tpu.memory_space<vmem>>, %arg7: memref<1x32xf32, #tpu.memory_space<vmem>>, %arg8: memref<32x32xbf16, #tpu.memory_space<vmem>>, %arg9: memref<1x32xf32, #tpu.memory_space<vmem>>, %arg10: memref<32x32xbf16, #tpu.memory_space<vmem>>, %arg11: memref<1x32xf32, #tpu.memory_space<vmem>>, %arg12: memref<4x32xf32, #tpu.memory_space<vmem>>, %arg13: memref<32x128xbf16, #tpu.memory_space<vmem>>, %arg14: memref<1x128xf32, #tpu.memory_space<vmem>>, %arg15: memref<128x32xbf16, #tpu.memory_space<vmem>>, %arg16: memref<1x32xf32, #tpu.memory_space<vmem>>, %arg17: memref<8x32xf32, #tpu.memory_space<vmem>>) attributes {dimension_semantics = [#tpu.dimension_semantics<parallel>], iteration_bounds = array<i64: 2>, scalar_prefetch = 0 : i64, scratch_operands = 0 : i64, tpu.core_type = #tpu.core_type<tc>, window_params = [{transform_indices = @transform_0, window_bounds = array<i64: 8, 32>}, {transform_indices = @transform_1, window_bounds = array<i64: 8, 8, 32>}, {transform_indices = @transform_2, window_bounds = array<i64: 8, 8, 1>}, {transform_indices = @transform_3, window_bounds = array<i64: 8, 1>}, {pipeline_mode = #tpu.pipeline_mode<synchronous>, transform_indices = @transform_4, window_bounds = array<i64: 32, 32>}, {pipeline_mode = #tpu.pipeline_mode<synchronous>, transform_indices = @transform_5, window_bounds = array<i64: 32, 32>}, {pipeline_mode = #tpu.pipeline_mode<synchronous>, transform_indices = @transform_6, window_bounds = array<i64: 1, 32>}, {pipeline_mode = #tpu.pipeline_mode<synchronous>, transform_indices = @transform_7, window_bounds = array<i64: 32, 32>}, {pipeline_mode = #tpu.pipeline_mode<synchronous>, transform_indices = @transform_8, window_bounds = array<i64: 1, 32>}, {pipeline_mode = #tpu.pipeline_mode<synchronous>, transform_indices = @transform_9, window_bounds = array<i64: 32, 32>}, {pipeline_mode = #tpu.pipeline_mode<synchronous>, transform_indices = @transform_10, window_bounds = array<i64: 1, 32>}, {pipeline_mode = #tpu.pipeline_mode<synchronous>, transform_indices = @transform_11, window_bounds = array<i64: 4, 32>}, {pipeline_mode = #tpu.pipeline_mode<synchronous>, transform_indices = @transform_12, window_bounds = array<i64: 32, 128>}, {pipeline_mode = #tpu.pipeline_mode<synchronous>, transform_indices = @transform_13, window_bounds = array<i64: 1, 128>}, {pipeline_mode = #tpu.pipeline_mode<synchronous>, transform_indices = @transform_14, window_bounds = array<i64: 128, 32>}, {pipeline_mode = #tpu.pipeline_mode<synchronous>, transform_indices = @transform_15, window_bounds = array<i64: 1, 32>}, {transform_indices = @transform_16, window_bounds = array<i64: 8, 32>}]} {
    %c0 = arith.constant 0 : index
    %c0_0 = arith.constant 0 : index
    %0 = vector.load %arg1[%c0, %c0_0] : memref<8x32xf32, #tpu.memory_space<vmem>>, vector<8x32xf32>
    %c0_1 = arith.constant 0 : index
    %c0_2 = arith.constant 0 : index
    %c0_3 = arith.constant 0 : index
    %1 = vector.load %arg3[%c0_1, %c0_2, %c0_3] : memref<8x8x1xf32, #tpu.memory_space<vmem>>, vector<8x8x1xf32>
    %c0_4 = arith.constant 0 : index
    %c0_5 = arith.constant 0 : index
    %2 = vector.load %arg4[%c0_4, %c0_5] : memref<8x1xf32, #tpu.memory_space<vmem>>, vector<8x1xf32>
    %c0_6 = arith.constant 0 : index
    %c0_7 = arith.constant 0 : index
    %3 = vector.load %arg12[%c0_6, %c0_7] : memref<4x32xf32, #tpu.memory_space<vmem>>, vector<1x32xf32>
    %c1 = arith.constant 1 : index
    %c0_8 = arith.constant 0 : index
    %4 = vector.load %arg12[%c1, %c0_8] : memref<4x32xf32, #tpu.memory_space<vmem>>, vector<1x32xf32>
    %c2 = arith.constant 2 : index
    %c0_9 = arith.constant 0 : index
    %5 = vector.load %arg12[%c2, %c0_9] : memref<4x32xf32, #tpu.memory_space<vmem>>, vector<1x32xf32>
    %c3 = arith.constant 3 : index
    %c0_10 = arith.constant 0 : index
    %6 = vector.load %arg12[%c3, %c0_10] : memref<4x32xf32, #tpu.memory_space<vmem>>, vector<1x32xf32>
    %cst = arith.constant dense<0.000000e+00> : vector<8xf32>
    %7 = vector.multi_reduction <add>, %0, %cst [1] : vector<8x32xf32> to vector<8xf32>
    %8 = vector.shape_cast %7 : vector<8xf32> to vector<8x1xf32>
    %cst_11 = arith.constant 3.200000e+01 : f32
    %9 = vector.broadcast %cst_11 : f32 to vector<8x1xf32>
    %10 = arith.divf %8, %9 : vector<8x1xf32>
    %11 = vector.broadcast %10 : vector<8x1xf32> to vector<8x32xf32>
    %12 = arith.subf %0, %11 : vector<8x32xf32>
    %13 = arith.mulf %12, %12 : vector<8x32xf32>
    %cst_12 = arith.constant dense<0.000000e+00> : vector<8xf32>
    %14 = vector.multi_reduction <add>, %13, %cst_12 [1] : vector<8x32xf32> to vector<8xf32>
    %15 = vector.shape_cast %14 : vector<8xf32> to vector<8x1xf32>
    %cst_13 = arith.constant 3.200000e+01 : f32
    %16 = vector.broadcast %cst_13 : f32 to vector<8x1xf32>
    %17 = arith.divf %15, %16 : vector<8x1xf32>
    %cst_14 = arith.constant 9.99999974E-6 : f32
    %18 = vector.broadcast %cst_14 : f32 to vector<8x1xf32>
    %19 = arith.addf %17, %18 : vector<8x1xf32>
    %20 = math.rsqrt %19 : vector<8x1xf32>
    %21 = vector.broadcast %20 : vector<8x1xf32> to vector<8x32xf32>
    %22 = arith.mulf %12, %21 : vector<8x32xf32>
    %23 = vector.broadcast %3 : vector<1x32xf32> to vector<8x32xf32>
    %24 = arith.mulf %22, %23 : vector<8x32xf32>
    %25 = vector.broadcast %4 : vector<1x32xf32> to vector<8x32xf32>
    %26 = arith.addf %24, %25 : vector<8x32xf32>
    %27 = arith.truncf %26 : vector<8x32xf32> to vector<8x32xbf16>
    %c0_15 = arith.constant 0 : index
    %c0_16 = arith.constant 0 : index
    %28 = vector.load %arg5[%c0_15, %c0_16] : memref<32x32xbf16, #tpu.memory_space<vmem>>, vector<32x32xbf16>
    %cst_17 = arith.constant dense<0.000000e+00> : vector<8x32xf32>
    %29 = tpu.matmul %27, %28, %cst_17 {dimension_numbers = #tpu.dot_dimension_numbers<[1], [0], [0], [1], [0, 0, 1, 1], [], []>} : vector<8x32xbf16>, vector<32x32xbf16>, vector<8x32xf32> -> vector<8x32xf32>
    %c0_18 = arith.constant 0 : index
    %c0_19 = arith.constant 0 : index
    %30 = vector.load %arg7[%c0_18, %c0_19] : memref<1x32xf32, #tpu.memory_space<vmem>>, vector<1x32xf32>
    %31 = vector.broadcast %30 : vector<1x32xf32> to vector<8x32xf32>
    %32 = arith.addf %29, %31 : vector<8x32xf32>
    %c0_20 = arith.constant 0 : index
    %c0_21 = arith.constant 0 : index
    %c0_22 = arith.constant 0 : index
    %33 = vector.load %arg2[%c0_20, %c0_21, %c0_22] : memref<8x8x32xf32, #tpu.memory_space<vmem>>, vector<8x8x32xf32>
    %34 = vector.shape_cast %33 : vector<8x8x32xf32> to vector<64x32xf32>
    %35 = arith.truncf %34 : vector<64x32xf32> to vector<64x32xbf16>
    %c0_23 = arith.constant 0 : index
    %c0_24 = arith.constant 0 : index
    %36 = vector.load %arg6[%c0_23, %c0_24] : memref<32x32xbf16, #tpu.memory_space<vmem>>, vector<32x32xbf16>
    %cst_25 = arith.constant dense<0.000000e+00> : vector<64x32xf32>
    %37 = tpu.matmul %35, %36, %cst_25 {dimension_numbers = #tpu.dot_dimension_numbers<[1], [0], [0], [1], [0, 0, 1, 1], [], []>} : vector<64x32xbf16>, vector<32x32xbf16>, vector<64x32xf32> -> vector<64x32xf32>
    %38 = vector.shape_cast %37 : vector<64x32xf32> to vector<8x8x32xf32>
    %39 = vector.shape_cast %32 : vector<8x32xf32> to vector<8x1x32xf32>
    %40 = vector.broadcast %39 : vector<8x1x32xf32> to vector<8x8x32xf32>
    %41 = arith.addf %38, %40 : vector<8x8x32xf32>
    %cst_26 = arith.constant 5.000000e-01 : f32
    %42 = vector.broadcast %cst_26 : f32 to vector<8x8x32xf32>
    %43 = arith.mulf %42, %41 : vector<8x8x32xf32>
    %cst_27 = arith.constant 4.471500e-02 : f32
    %44 = vector.broadcast %cst_27 : f32 to vector<8x8x32xf32>
    %45 = arith.mulf %44, %41 : vector<8x8x32xf32>
    %46 = arith.mulf %45, %41 : vector<8x8x32xf32>
    %47 = arith.mulf %46, %41 : vector<8x8x32xf32>
    %48 = arith.addf %41, %47 : vector<8x8x32xf32>
    %cst_28 = arith.constant 0.797884583 : f32
    %49 = vector.broadcast %cst_28 : f32 to vector<8x8x32xf32>
    %50 = arith.mulf %49, %48 : vector<8x8x32xf32>
    %51 = math.tanh %50 : vector<8x8x32xf32>
    %cst_29 = arith.constant 1.000000e+00 : f32
    %52 = vector.broadcast %cst_29 : f32 to vector<8x8x32xf32>
    %53 = arith.addf %52, %51 : vector<8x8x32xf32>
    %54 = arith.mulf %43, %53 : vector<8x8x32xf32>
    %55 = vector.shape_cast %54 : vector<8x8x32xf32> to vector<64x32xf32>
    %56 = arith.truncf %55 : vector<64x32xf32> to vector<64x32xbf16>
    %c0_30 = arith.constant 0 : index
    %c0_31 = arith.constant 0 : index
    %57 = vector.load %arg8[%c0_30, %c0_31] : memref<32x32xbf16, #tpu.memory_space<vmem>>, vector<32x32xbf16>
    %cst_32 = arith.constant dense<0.000000e+00> : vector<64x32xf32>
    %58 = tpu.matmul %56, %57, %cst_32 {dimension_numbers = #tpu.dot_dimension_numbers<[1], [0], [0], [1], [0, 0, 1, 1], [], []>} : vector<64x32xbf16>, vector<32x32xbf16>, vector<64x32xf32> -> vector<64x32xf32>
    %c0_33 = arith.constant 0 : index
    %c0_34 = arith.constant 0 : index
    %59 = vector.load %arg9[%c0_33, %c0_34] : memref<1x32xf32, #tpu.memory_space<vmem>>, vector<1x32xf32>
    %60 = vector.broadcast %59 : vector<1x32xf32> to vector<64x32xf32>
    %61 = arith.addf %58, %60 : vector<64x32xf32>
    %cst_35 = arith.constant 5.000000e-01 : f32
    %62 = vector.broadcast %cst_35 : f32 to vector<64x32xf32>
    %63 = arith.mulf %62, %61 : vector<64x32xf32>
    %cst_36 = arith.constant 4.471500e-02 : f32
    %64 = vector.broadcast %cst_36 : f32 to vector<64x32xf32>
    %65 = arith.mulf %64, %61 : vector<64x32xf32>
    %66 = arith.mulf %65, %61 : vector<64x32xf32>
    %67 = arith.mulf %66, %61 : vector<64x32xf32>
    %68 = arith.addf %61, %67 : vector<64x32xf32>
    %cst_37 = arith.constant 0.797884583 : f32
    %69 = vector.broadcast %cst_37 : f32 to vector<64x32xf32>
    %70 = arith.mulf %69, %68 : vector<64x32xf32>
    %71 = math.tanh %70 : vector<64x32xf32>
    %cst_38 = arith.constant 1.000000e+00 : f32
    %72 = vector.broadcast %cst_38 : f32 to vector<64x32xf32>
    %73 = arith.addf %72, %71 : vector<64x32xf32>
    %74 = arith.mulf %63, %73 : vector<64x32xf32>
    %75 = vector.shape_cast %74 : vector<64x32xf32> to vector<8x8x32xf32>
    %76 = vector.broadcast %1 : vector<8x8x1xf32> to vector<8x8x32xf32>
    %77 = arith.mulf %75, %76 : vector<8x8x32xf32>
    %cst_39 = arith.constant dense<0.000000e+00> : vector<8x32xf32>
    %78 = vector.multi_reduction <add>, %77, %cst_39 [1] : vector<8x8x32xf32> to vector<8x32xf32>
    %cst_40 = arith.constant dense<0.000000e+00> : vector<8x1xf32>
    %79 = vector.multi_reduction <add>, %1, %cst_40 [1] : vector<8x8x1xf32> to vector<8x1xf32>
    %80 = arith.truncf %78 : vector<8x32xf32> to vector<8x32xbf16>
    %c0_41 = arith.constant 0 : index
    %c0_42 = arith.constant 0 : index
    %81 = vector.load %arg10[%c0_41, %c0_42] : memref<32x32xbf16, #tpu.memory_space<vmem>>, vector<32x32xbf16>
    %cst_43 = arith.constant dense<0.000000e+00> : vector<8x32xf32>
    %82 = tpu.matmul %80, %81, %cst_43 {dimension_numbers = #tpu.dot_dimension_numbers<[1], [0], [0], [1], [0, 0, 1, 1], [], []>} : vector<8x32xbf16>, vector<32x32xbf16>, vector<8x32xf32> -> vector<8x32xf32>
    %c0_44 = arith.constant 0 : index
    %c0_45 = arith.constant 0 : index
    %83 = vector.load %arg11[%c0_44, %c0_45] : memref<1x32xf32, #tpu.memory_space<vmem>>, vector<1x32xf32>
    %84 = vector.broadcast %79 : vector<8x1xf32> to vector<8x32xf32>
    %85 = vector.broadcast %83 : vector<1x32xf32> to vector<8x32xf32>
    %86 = arith.mulf %84, %85 : vector<8x32xf32>
    %87 = arith.addf %82, %86 : vector<8x32xf32>
    %88 = arith.addf %0, %87 : vector<8x32xf32>
    %cst_46 = arith.constant dense<0.000000e+00> : vector<8xf32>
    %89 = vector.multi_reduction <add>, %88, %cst_46 [1] : vector<8x32xf32> to vector<8xf32>
    %90 = vector.shape_cast %89 : vector<8xf32> to vector<8x1xf32>
    %cst_47 = arith.constant 3.200000e+01 : f32
    %91 = vector.broadcast %cst_47 : f32 to vector<8x1xf32>
    %92 = arith.divf %90, %91 : vector<8x1xf32>
    %93 = vector.broadcast %92 : vector<8x1xf32> to vector<8x32xf32>
    %94 = arith.subf %88, %93 : vector<8x32xf32>
    %95 = arith.mulf %94, %94 : vector<8x32xf32>
    %cst_48 = arith.constant dense<0.000000e+00> : vector<8xf32>
    %96 = vector.multi_reduction <add>, %95, %cst_48 [1] : vector<8x32xf32> to vector<8xf32>
    %97 = vector.shape_cast %96 : vector<8xf32> to vector<8x1xf32>
    %cst_49 = arith.constant 3.200000e+01 : f32
    %98 = vector.broadcast %cst_49 : f32 to vector<8x1xf32>
    %99 = arith.divf %97, %98 : vector<8x1xf32>
    %cst_50 = arith.constant 9.99999974E-6 : f32
    %100 = vector.broadcast %cst_50 : f32 to vector<8x1xf32>
    %101 = arith.addf %99, %100 : vector<8x1xf32>
    %102 = math.rsqrt %101 : vector<8x1xf32>
    %103 = vector.broadcast %102 : vector<8x1xf32> to vector<8x32xf32>
    %104 = arith.mulf %94, %103 : vector<8x32xf32>
    %105 = vector.broadcast %5 : vector<1x32xf32> to vector<8x32xf32>
    %106 = arith.mulf %104, %105 : vector<8x32xf32>
    %107 = vector.broadcast %6 : vector<1x32xf32> to vector<8x32xf32>
    %108 = arith.addf %106, %107 : vector<8x32xf32>
    %109 = arith.truncf %108 : vector<8x32xf32> to vector<8x32xbf16>
    %c0_51 = arith.constant 0 : index
    %c0_52 = arith.constant 0 : index
    %110 = vector.load %arg13[%c0_51, %c0_52] : memref<32x128xbf16, #tpu.memory_space<vmem>>, vector<32x128xbf16>
    %cst_53 = arith.constant dense<0.000000e+00> : vector<8x128xf32>
    %111 = tpu.matmul %109, %110, %cst_53 {dimension_numbers = #tpu.dot_dimension_numbers<[1], [0], [0], [1], [0, 0, 1, 1], [], []>} : vector<8x32xbf16>, vector<32x128xbf16>, vector<8x128xf32> -> vector<8x128xf32>
    %c0_54 = arith.constant 0 : index
    %c0_55 = arith.constant 0 : index
    %112 = vector.load %arg14[%c0_54, %c0_55] : memref<1x128xf32, #tpu.memory_space<vmem>>, vector<1x128xf32>
    %113 = vector.broadcast %112 : vector<1x128xf32> to vector<8x128xf32>
    %114 = arith.addf %111, %113 : vector<8x128xf32>
    %cst_56 = arith.constant 5.000000e-01 : f32
    %115 = vector.broadcast %cst_56 : f32 to vector<8x128xf32>
    %116 = arith.mulf %115, %114 : vector<8x128xf32>
    %cst_57 = arith.constant 4.471500e-02 : f32
    %117 = vector.broadcast %cst_57 : f32 to vector<8x128xf32>
    %118 = arith.mulf %117, %114 : vector<8x128xf32>
    %119 = arith.mulf %118, %114 : vector<8x128xf32>
    %120 = arith.mulf %119, %114 : vector<8x128xf32>
    %121 = arith.addf %114, %120 : vector<8x128xf32>
    %cst_58 = arith.constant 0.797884583 : f32
    %122 = vector.broadcast %cst_58 : f32 to vector<8x128xf32>
    %123 = arith.mulf %122, %121 : vector<8x128xf32>
    %124 = math.tanh %123 : vector<8x128xf32>
    %cst_59 = arith.constant 1.000000e+00 : f32
    %125 = vector.broadcast %cst_59 : f32 to vector<8x128xf32>
    %126 = arith.addf %125, %124 : vector<8x128xf32>
    %127 = arith.mulf %116, %126 : vector<8x128xf32>
    %128 = arith.truncf %127 : vector<8x128xf32> to vector<8x128xbf16>
    %c0_60 = arith.constant 0 : index
    %c0_61 = arith.constant 0 : index
    %129 = vector.load %arg15[%c0_60, %c0_61] : memref<128x32xbf16, #tpu.memory_space<vmem>>, vector<128x32xbf16>
    %cst_62 = arith.constant dense<0.000000e+00> : vector<8x32xf32>
    %130 = tpu.matmul %128, %129, %cst_62 {dimension_numbers = #tpu.dot_dimension_numbers<[1], [0], [0], [1], [0, 0, 1, 1], [], []>} : vector<8x128xbf16>, vector<128x32xbf16>, vector<8x32xf32> -> vector<8x32xf32>
    %131 = arith.addf %88, %130 : vector<8x32xf32>
    %c0_63 = arith.constant 0 : index
    %c0_64 = arith.constant 0 : index
    %132 = vector.load %arg16[%c0_63, %c0_64] : memref<1x32xf32, #tpu.memory_space<vmem>>, vector<1x32xf32>
    %133 = vector.broadcast %132 : vector<1x32xf32> to vector<8x32xf32>
    %134 = arith.addf %131, %133 : vector<8x32xf32>
    %135 = vector.broadcast %2 : vector<8x1xf32> to vector<8x32xf32>
    %136 = arith.mulf %135, %134 : vector<8x32xf32>
    %c0_65 = arith.constant 0 : index
    %c0_66 = arith.constant 0 : index
    %137 = vector.load %arg17[%c0_65, %c0_66] : memref<8x32xf32, #tpu.memory_space<vmem>>, vector<8x32xf32>
    tpu.vector_store %arg17[%c0_65, %c0_66], %136 {strides = array<i32>} : memref<8x32xf32, #tpu.memory_space<vmem>>, vector<8x32xf32>,
    return
  }
  func.func @transform_0(%arg0: i32) -> (i32, i32) {
    %c0_i32 = arith.constant 0 : i32
    %c0_i32_0 = arith.constant 0 : i32
    return %arg0, %c0_i32 : i32, i32
  }
  func.func @transform_1(%arg0: i32) -> (i32, i32, i32) {
    %c0_i32 = arith.constant 0 : i32
    %c0_i32_0 = arith.constant 0 : i32
    %c0_i32_1 = arith.constant 0 : i32
    return %arg0, %c0_i32, %c0_i32_0 : i32, i32, i32
  }
  func.func @transform_2(%arg0: i32) -> (i32, i32, i32) {
    %c0_i32 = arith.constant 0 : i32
    %c0_i32_0 = arith.constant 0 : i32
    %c0_i32_1 = arith.constant 0 : i32
    return %arg0, %c0_i32, %c0_i32_0 : i32, i32, i32
  }
  func.func @transform_3(%arg0: i32) -> (i32, i32) {
    %c0_i32 = arith.constant 0 : i32
    %c0_i32_0 = arith.constant 0 : i32
    return %arg0, %c0_i32 : i32, i32
  }
  func.func @transform_4(%arg0: i32) -> (i32, i32) {
    %c0_i32 = arith.constant 0 : i32
    %c0_i32_0 = arith.constant 0 : i32
    %c0_i32_1 = arith.constant 0 : i32
    return %c0_i32, %c0_i32_0 : i32, i32
  }
  func.func @transform_5(%arg0: i32) -> (i32, i32) {
    %c0_i32 = arith.constant 0 : i32
    %c0_i32_0 = arith.constant 0 : i32
    %c0_i32_1 = arith.constant 0 : i32
    return %c0_i32, %c0_i32_0 : i32, i32
  }
  func.func @transform_6(%arg0: i32) -> (i32, i32) {
    %c0_i32 = arith.constant 0 : i32
    %c0_i32_0 = arith.constant 0 : i32
    %c0_i32_1 = arith.constant 0 : i32
    return %c0_i32, %c0_i32_0 : i32, i32
  }
  func.func @transform_7(%arg0: i32) -> (i32, i32) {
    %c0_i32 = arith.constant 0 : i32
    %c0_i32_0 = arith.constant 0 : i32
    %c0_i32_1 = arith.constant 0 : i32
    return %c0_i32, %c0_i32_0 : i32, i32
  }
  func.func @transform_8(%arg0: i32) -> (i32, i32) {
    %c0_i32 = arith.constant 0 : i32
    %c0_i32_0 = arith.constant 0 : i32
    %c0_i32_1 = arith.constant 0 : i32
    return %c0_i32, %c0_i32_0 : i32, i32
  }
  func.func @transform_9(%arg0: i32) -> (i32, i32) {
    %c0_i32 = arith.constant 0 : i32
    %c0_i32_0 = arith.constant 0 : i32
    %c0_i32_1 = arith.constant 0 : i32
    return %c0_i32, %c0_i32_0 : i32, i32
  }
  func.func @transform_10(%arg0: i32) -> (i32, i32) {
    %c0_i32 = arith.constant 0 : i32
    %c0_i32_0 = arith.constant 0 : i32
    %c0_i32_1 = arith.constant 0 : i32
    return %c0_i32, %c0_i32_0 : i32, i32
  }
  func.func @transform_11(%arg0: i32) -> (i32, i32) {
    %c0_i32 = arith.constant 0 : i32
    %c0_i32_0 = arith.constant 0 : i32
    %c0_i32_1 = arith.constant 0 : i32
    return %c0_i32, %c0_i32_0 : i32, i32
  }
  func.func @transform_12(%arg0: i32) -> (i32, i32) {
    %c0_i32 = arith.constant 0 : i32
    %c0_i32_0 = arith.constant 0 : i32
    %c0_i32_1 = arith.constant 0 : i32
    return %c0_i32, %c0_i32_0 : i32, i32
  }
  func.func @transform_13(%arg0: i32) -> (i32, i32) {
    %c0_i32 = arith.constant 0 : i32
    %c0_i32_0 = arith.constant 0 : i32
    %c0_i32_1 = arith.constant 0 : i32
    return %c0_i32, %c0_i32_0 : i32, i32
  }
  func.func @transform_14(%arg0: i32) -> (i32, i32) {
    %c0_i32 = arith.constant 0 : i32
    %c0_i32_0 = arith.constant 0 : i32
    %c0_i32_1 = arith.constant 0 : i32
    return %c0_i32, %c0_i32_0 : i32, i32
  }
  func.func @transform_15(%arg0: i32) -> (i32, i32) {
    %c0_i32 = arith.constant 0 : i32
    %c0_i32_0 = arith.constant 0 : i32
    %c0_i32_1 = arith.constant 0 : i32
    return %c0_i32, %c0_i32_0 : i32, i32
  }
  func.func @transform_16(%arg0: i32) -> (i32, i32) {
    %c0_i32 = arith.constant 0 : i32
    %c0_i32_0 = arith.constant 0 : i32
    return %arg0, %c0_i32 : i32, i32
  }
}

</mosaic_0001>

<bundles_post_ra>
// kernel: tpu_custom_call.1
= control target key start
LH: loop header
LB: loop body
LE: loop exit
PB: predicated region body
PF: predicated region fallthrough
CT: control target
= control target key end

     0   :  { %s2629_s0 = inlined_call_operand.vmem [shape: f32[16,32], index: 0, kind: input, shape index: {}]   ;;  %s2630_s1 = inlined_call_operand.vmem [shape: f32[16,8,32], index: 1, kind: input, shape index: {}]   ;;  %s2631_s2 = inlined_call_operand.vmem [shape: f32[16,8,1], index: 2, kind: input, shape index: {}]   ;;  %s2632_s3 = inlined_call_operand.vmem [shape: f32[16,1], index: 3, kind: input, shape index: {}]   ;;  %s2633_s4 = inlined_call_operand.vmem [shape: bf16[32,32], index: 4, kind: input, shape index: {}]   ;;  %s2634_s5 = inlined_call_operand.vmem [shape: bf16[32,32], index: 5, kind: input, shape index: {}]   ;;  %s2635_s6 = inlined_call_operand.vmem [shape: f32[1,32], index: 6, kind: input, shape index: {}]   ;;  %s2636_s7 = inlined_call_operand.vmem [shape: bf16[32,32], index: 7, kind: input, shape index: {}]   ;;  %s2637_s8 = inlined_call_operand.vmem [shape: f32[1,32], index: 8, kind: input, shape index: {}]   ;;  %s2638_s9 = inlined_call_operand.vmem [shape: bf16[32,32], index: 9, kind: input, shape index: {}]   ;;  %s2639_s10 = inlined_call_operand.vmem [shape: f32[1,32], index: 10, kind: input, shape index: {}]   ;;  %s2640_s11 = inlined_call_operand.vmem [shape: f32[4,32], index: 11, kind: input, shape index: {}]   ;;  %s2641_s12 = inlined_call_operand.vmem [shape: bf16[32,128], index: 12, kind: input, shape index: {}]   ;;  %s2642_s13 = inlined_call_operand.vmem [shape: f32[1,128], index: 13, kind: input, shape index: {}]   ;;  %s2643_s14 = inlined_call_operand.vmem [shape: bf16[128,32], index: 14, kind: input, shape index: {}]   ;;  %s2644_s15 = inlined_call_operand.vmem [shape: f32[1,32], index: 15, kind: input, shape index: {}]   ;;  %s2645_s16 = inlined_call_operand.hbm [shape: f32[16,32], index: 16, kind: output, shape index: {}]  }
   0x1   :  { %2650 = sst [smem:[#allocation8_spill]] %s2629_s0 }
   0x2   :  { %2651 = sst [smem:[#allocation9_spill]] %s2630_s1 }
   0x3   :  { %2652 = sst [smem:[#allocation10_spill]] %s2633_s4 }
   0x4   :  { %21 = vsyncpa [#allocation3], 0 }
   0x5   :  { %23 = vsyncpa [#allocation3 + $0x1], 0  ;;  %s2210_s21 = smov 0   ;;  %s2212_s22 = smov 0  }
   0x6   :  { %s2214_s23 = smov 0   ;;  %s2216_s24 = smov 0  }
   0x7 LB: > { %2653 = sst [smem:[#allocation5_spill]] %s2114_s23  ;;  %s2231_s25 = sadd.s32 4294967295, %s2118_s24   ;;  %s2118_s24 = sphi %s2216_s24, %s2662_s24   ;;  %s2114_s23 = sphi %s2214_s23, %s2664_s23   ;;  %s2110_s22 = sphi %s2212_s22, %s2666_s22   ;;  %s2106_s21 = sphi %s2210_s21, %s2665_s21  }
   0x8   : > { %s1803_s26 = sadd.s32 4294967294, %s2118_s24   ;;  %s2235_s27 = sadd.s32 1, %s2118_s24  }
   0x9   : > { %2654 = sst [smem:[#allocation6_spill]] %s2235_s27  ;;  %s392_s28 = sadd.s32 1, %s2114_s23 }
   0xa   : > { %s389_s29 = ssub.s32 %s2118_s24, %s2235_s27  ;;  %p402_p0 = scmp.ne.s32.totalorder %s2114_s23, %s2110_s22 }
   0xb   : > { %p390_p1 = scmp.eq.s32.totalorder %s389_s29, 0  ;;  %p403_p2 = scmp.eq.s32.totalorder %s2231_s25, 1 }
   0xc   : > { %p408_p3 = scmp.ne.s32.totalorder %s2110_s22, %s2106_s21  ;;  %p409_p4 = scmp.eq.s32.totalorder %s1803_s26, 1 }
   0xd   : > { %s2246_s30 = scalar_select %p390_p1, %s2114_s23, %s392_s28  }
   0xe   : > { %p2248_p5 = por %p403_p2, %p402_p0  ;;  %p2252_p6 = por %p409_p4, %p408_p3 }
   0xf   : > { %2655 = sst [smem:[#allocation7_spill]] %s2246_s30  ;;  %p1806_p7 = scmp.ge.s32.totalorder %s2118_s24, 1 }
  0x10   : > { %p495_p8 = scmp.lt.s32.totalorder %s2118_s24, 3 }
  0x12   : > { %p496_p9 = pnand %p1806_p7, %p495_p8 }
  0x13   : > { %p558_p10 = scmp.lt.s32.totalorder (!%p496_p9), %s2231_s25, 1  ;;  %vm593_vm0 = vcmask (!%p496_p9), 261120   ;;  %s2658_s28 = sld [smem:[#allocation8_spill]] (!%p496_p9)  ;;  %v2000_v8 = vld [vmem:[%s2634_s5] sm:$0xff] (!%p496_p9)   ;;  %v2120_v9 = vmov (!%p496_p9), 0.0   ;;  %v2002_v10 = vld [vmem:[%s2634_s5 + $0x8] sm:$0xff] (!%p496_p9)  }
  0x14   : > { %499 = sbr.rel (%p496_p9) target bundleno = 1879 (0x757), region = 84  ;;  %s2659_s4 = sld [smem:[#allocation10_spill]] (!%p496_p9)  ;;  %1886 = vmatprep.subr.bf16.mxu0 (!%p496_p9), %v2120_v9  ;;  %vm2121_vm1 = vmmov (!%p496_p9), 0   ;;  %1894 = vmatprep.subr.bf16.mxu1 (!%p496_p9), %v2000_v8  ;;  %v1814_v28 = vld [vmem:[%s2640_s11] ss:$0 sm:$0xff] (!%p496_p9)  ;;  %v2004_v43 = vld [vmem:[%s2636_s7 + $0x8] sm:$0xff] (!%p496_p9)  }
  0x15   : > { %1890 = vmatprep.mubr.msk.bf16.mxu0 (!%p496_p9), %vm2121_vm1, %v2120_v9  ;;  %1895 = vmatpush3.bf16.msra.mxu1 (!%p496_p9), %v2000_v8  ;;  %s1809_s27 = sshll.u32 (!%p496_p9), %s2231_s25, 3  ;;  %s2660_s1 = sld [smem:[#allocation9_spill]] (!%p496_p9)  ;;  %v1815_v30 = vld [vmem:[%s2640_s11 + $0x1] ss:$0 sm:$0xff] (!%p496_p9)  ;;  %vm1240_vm2 = vcmask (!%p496_p9), 7168   ;;  %v2122_v44 = vmov (!%p496_p9), 0  }
  0x16   : > { %1896 = vmatprep.subr.bf16.mxu1 (!%p496_p9), %v2002_v10  ;;  %p563_p11 = scmp.lt.s32.totalorder (!%p496_p9), %s1809_s27, 15  ;;  %v2003_v42 = vld [vmem:[%s2636_s7] sm:$0xff] (!%p496_p9)   ;;  %1997 = vset.pattern.permute.xlu1 (!%p496_p9), %v2122_v44  ;;  %vm1380_vm3 = vcmask (!%p496_p9), 1041409   ;;  %vm1382_vm4 = vcmask (!%p496_p9), 1042434   ;;  %vm1384_vm5 = vcmask (!%p496_p9), 1043459   ;;  %vm1386_vm6 = vcmask (!%p496_p9), 1044484  }
  0x17   : > { %1998 = vset.pattern.permute.xlu0 (!%p496_p9), %v2122_v44  ;;  %vm1388_vm7 = vcmask (!%p496_p9), 1045509   ;;  %vm1390_vm8 = vcmask (!%p496_p9), 1046534   ;;  %vm1392_vm9 = vcmask (!%p496_p9), 1047559  }
  0x19   : > { %1897 = vmatpush3.bf16.msra.mxu1 (!%p496_p9), %v2002_v10 }
  0x1a   : > { %v1999_v7 = vld [vmem:[%s2659_s4] sm:$0xff] (!%p496_p9)   ;;  %v2001_v11 = vld [vmem:[%s2659_s4 + $0x8] sm:$0xff] (!%p496_p9)   ;;  %1934 = vmatprep.subr.bf16.mxu1 (!%p496_p9), %v2120_v9 }
  0x1b   : > { %s2260_s18 = scalar_select %p558_p10, %s2231_s25, 1  ;;  %1887 = vmatpush3.bf16.msra.mxu0 %v1999_v7 }
  0x1c   : > { %1888 = vmatprep.subr.bf16.mxu0 %v2120_v9  ;;  %s2668_s27 = smov (!%p563_p11, %s1809_s27), 15 }
  0x1d   : > { %s2649_s19 = sshll.u32 %s2260_s18, 3  ;;  %s1810_s20 = sshll.u32 %s2668_s27, 3 }
  0x1e   : > { %s2268_s29 = scalar_lea.vmem %s2658_s28, %s2649_s19  ;;  %s566_s23 = scalar_lea.vmem %s2660_s1, %s1810_s20 }
  0x1f   : > { %v579_v0 = vld [vmem:[%s2268_s29] sm:$0xff]  ;;  %1889 = vmatpush3.bf16.msra.mxu0 %v2001_v11  ;;  %v686_v13 = vld [vmem:[%s566_s23 + $0x8] sm:$0xff]  ;;  %v687_v15 = vld [vmem:[%s566_s23 + $0x10] sm:$0xff]  ;;  %s2340_s4 = scalar_lea.vmem %s2631_s2, %s1810_s20  ;;  %s555_s28 = sand.u32 1, %s2110_s22  }
  0x20   : > { %v594_v1 = vsel %vm593_vm0, %v579_v0, 0.0  ;;  %v685_v12 = vld [vmem:[%s566_s23] sm:$0xff]  ;;  %v688_v16 = vld [vmem:[%s566_s23 + $0x18] sm:$0xff]  ;;  %v690_v19 = vld [vmem:[%s566_s23 + $0x28] sm:$0xff]  ;;  %1906 = vmatprep.subr.bf16.mxu0 %v2003_v42  ;;  %s1853_s19 = sshll.u32 %s2231_s25, 7  ;;  %s1695_s26 = scalar_lea.sflag [#allocation3], %s555_s28 }
  0x21   : > { %595 = vadd.xlane.f32.xlu0 %v594_v1  ;;  %v693_v14 = vpack.c.bf16 %v686_v13, %v685_v12  ;;  %v694_v17 = vpack.c.bf16 %v688_v16, %v687_v15  ;;  %v689_v18 = vld [vmem:[%s566_s23 + $0x20] sm:$0xff]  ;;  %v691_v21 = vld [vmem:[%s566_s23 + $0x30] sm:$0xff]  ;;  %v692_v22 = vld [vmem:[%s566_s23 + $0x38] sm:$0xff]  ;;  %s1807_s23 = sshll.u32 %s555_s28, 3 }
  0x22   : > { %v695_v20 = vpack.c.bf16 %v690_v19, %v689_v18  ;;  %v696_v23 = vpack.c.bf16 %v692_v22, %v691_v21  ;;  %v580_v45 = vld [vmem:[%s2340_s4] sm:$0xff]  ;;  %v581_v46 = vld [vmem:[%s2340_s4 + $0x8] sm:$0xff]  ;;  %v586_v48 = vld [vmem:[%s2340_s4 + $0x30] sm:$0xff]  ;;  %s557_s27 = scalar_lea.vmem [#allocation2], %s1807_s23  ;;  %s2124_s23 = smov [#allocation2]  }
  0x23   : > { %1898 = vmatprep.mubr.msk.bf16.mxu1 %vm593_vm0, %v693_v14  ;;  %1138 = vperm.xlu1 %1997, %v580_v45   ;;  %v1248_v47 = vsel %vm1240_vm2, %v581_v46, 0.0  ;;  %v582_v49 = vld [vmem:[%s2340_s4 + $0x10] sm:$0xff]  ;;  %v1283_v50 = vsel %vm1240_vm2, %v586_v48, 0.0  ;;  %v583_v53 = vld [vmem:[%s2340_s4 + $0x18] sm:$0xff]  ;;  %v1241_v59 = vsel %vm1240_vm2, %v580_v45, 0.0  ;;  %v584_v60 = vld [vmem:[%s2340_s4 + $0x20] sm:$0xff] }
  0x24   : > { %1899 = vmatmul.mubr.msk.bf16.vlgmr.msra.gmra.mrb[0].mxu1 %vm593_vm0, %v694_v17  ;;  %v1249_v51 = vrot.slane %v1248_v47, 4  ;;  %v1284_v52 = vrot.slane %v1283_v50, 4  ;;  %v1255_v54 = vsel %vm1240_vm2, %v582_v49, 0.0  ;;  %v1262_v62 = vsel %vm1240_vm2, %v583_v53, 0.0  ;;  %v587_v17 = vld [vmem:[%s2340_s4 + $0x38] sm:$0xff]  ;;  %s2060_s1 = sshll.u32 %s2124_s23, 4  ;;  %s2061_s1 = int_to_ptr.vmem [resolvable:$false] %s2060_s1 }
  0x25   : > { %1902 = vmatprep.mubr.msk.bf16.mxu1 %vm593_vm0, %v695_v20  ;;  %v1256_v58 = vrot.slane %v1255_v54, 4  ;;  %v1242_v63 = vrot.slane %v1241_v59, 4  ;;  %v1269_v8 = vsel %vm1240_vm2, %v584_v60, 0.0  ;;  %v1290_v20 = vsel %vm1240_vm2, %v587_v17, 0.0 }
  0x26   : > { %v1285_v55 = vadd.f32 %v1284_v52, %v1283_v50  ;;  %v1250_v56 = vadd.f32 %v1249_v51, %v1248_v47  ;;  %v1270_v11 = vrot.slane %v1269_v8, 4 }
  0x27   : > { %1143 = vperm.xlu1 %1997, %v581_v46   ;;  %v1257_v1 = vadd.f32 %v1256_v58, %v1255_v54  ;;  %v2123_v54 = vmov 1966171168  }
  0x28   : > { %v1286_v57 = vrot.slane %v1285_v55, 2  ;;  %v1271_v18 = vadd.f32 %v1270_v11, %v1269_v8 }
  0x29   : > { %v1258_v10 = vrot.slane %v1257_v1, 2 }
  0x2a   : > { %v1287_v61 = vadd.f32 %v1286_v57, %v1285_v55  ;;  %v793_v55 = vunpack.c.l.s4 %v2123_v54 }
  0x2b   : > { %1153 = vperm.xlu1 %1997, %v583_v53   ;;  %v1259_v16 = vadd.f32 %v1258_v10, %v1257_v1 }
  0x2c   : > { %1903 = vmatmul.mubr.msk.bf16.gmra.mrb[4].mxu1 %vm593_vm0, %v696_v23  ;;  %v794_v57 = vunpack.c.0.s8 %v793_v55 }
  0x2d   : > { %1950 = vmatprep.mubr.msk.bf16.mxu1 %vm2121_vm1, %v2120_v9 }
  0x2f   : > { %1158 = vperm.xlu1 %1997, %v584_v60  }
  0xae   : > { %v596_v2 = vpop.xlane.xlu0 %595 }
  0xaf   : > { %v598_v3 = vmul.f32 0.03125, %v596_v2  ;;  %v1288_v2 = vrot.slane %v1287_v61, 1 }
  0xb1   : > { %v599_v4 = vsub.f32 %v579_v0, %v598_v3  ;;  %v1251_v0 = vrot.slane %v1250_v56, 2  ;;  %v585_v3 = vld [vmem:[%s2340_s4 + $0x28] sm:$0xff]  ;;  %s2661_s4 = sshll.u32 %s2260_s18, 3  ;;  %s2586_s18 = scalar_lea.hbm %s2645_s16, %s1853_s19 }
  0xb2   : > { %1163 = vperm.xlu1 %1997, %v585_v3   ;;  %v1276_v12 = vsel %vm1240_vm2, %v585_v3, 0.0  ;;  %s577_s20 = scalar_lea.vmem %s2632_s3, %s2661_s4  ;;  %s2062_s4 = scalar_lea.vmem %s2061_s1, 256 }
  0xb3   : > { %v600_v5 = vmul.f32 %v599_v4, %v599_v4  ;;  %v1252_v7 = vadd.f32 %v1251_v0, %v1250_v56  ;;  %v1277_v19 = vrot.slane %v1276_v12, 4  ;;  %v795_v56 = vlaneseq }
  0xb5   : > { %v601_v6 = vsel %vm593_vm0, %v600_v5, 0.0  ;;  %v1263_v5 = vrot.slane %v1262_v62, 4  ;;  %v1253_v15 = vrot.slane %v1252_v7, 1  ;;  %v796_v58 = vshrl.u32 %v795_v56, 7 }
  0xb6   : > { %602 = vadd.xlane.f32.xlu0 %v601_v6  ;;  %v1243_v6 = vadd.f32 %v1242_v63, %v1241_v59  ;;  %1168 = vperm.xlu1 %1997, %v586_v48   ;;  %v1816_v59 = vld [vmem:[%s2635_s6] ss:$0 sm:$0xff] }
  0xb7   : > { %v1264_v14 = vadd.f32 %v1263_v5, %v1262_v62  ;;  %v1254_v23 = vadd.f32 %v1253_v15, %v1252_v7  ;;  %v797_v60 = vsub.s32 %v794_v57, %v796_v58  ;;  %v842_v3 = vsub.s32 0, %v796_v58 }
  0xb8   : > { %v1244_v13 = vrot.slane %v1243_v6, 2 }
  0xb9   : > { %v1265_v22 = vrot.slane %v1264_v14, 2 }
  0xba   : > { %v1245_v21 = vadd.f32 %v1244_v13, %v1243_v6  ;;  %1173 = vperm.xlu1 %1997, %v587_v17  }
  0xbe   : > { %1317 = vperm.xlu1 %1997, %v1254_v23  }
  0xcc   : > { %1148 = vperm.xlu0 %1998, %v582_v49  }
  0xf7   : > { %v2312_v34 = vpop.f32.mrb[0].mxu1 }
  0xf8   : > { %v2314_v35 = vpop.f32.mrb[1].mxu1 }
  0xf9   : > { %v2316_v36 = vpop.f32.mrb[2].mxu1 }
  0xfa   : > { %v2318_v37 = vpop.f32.mrb[3].mxu1 }
  0xff   : > { %v2320_v38 = vpop.f32.mrb[4].mxu1 }
 0x100   : > { %v2322_v39 = vpop.f32.mrb[5].mxu1 }
 0x101   : > { %v2324_v40 = vpop.f32.mrb[6].mxu1 }
 0x102   : > { %v2326_v41 = vpop.f32.mrb[7].mxu1 }
 0x143   : > { %v603_v24 = vpop.xlane.xlu0 %602 }
 0x144   : > { %v604_v25 = vmul.f32 0.03125, %v603_v24  ;;  %v1260_v24 = vrot.slane %v1259_v16, 1 }
 0x146   : > { %v605_v26 = vadd.f32 1e-05, %v604_v25  ;;  %v1278_v25 = vadd.f32 %v1277_v19, %v1276_v12 }
 0x148   : > { %2017 = vrsqrt.f32 %v605_v26  ;;  %v1291_v26 = vrot.slane %v1290_v20, 4 }
 0x152   : > { %v2018_v27 = vpop.eup %2017 }
 0x153   : > { %v607_v29 = vmul.f32 %v2018_v27, %v599_v4  ;;  %v1289_v4 = vadd.f32 %v1288_v2, %v1287_v61  ;;  %v1266_v27 = vadd.f32 %v1265_v22, %v1264_v14 }
 0x155   : > { %v612_v31 = vmul.f32 %v1814_v28, %v607_v29  ;;  %1342 = vperm.xlu0 %1998, %v1289_v4   ;;  %v1272_v28 = vrot.slane %v1271_v18, 2  ;;  %v1261_v29 = vadd.f32 %v1260_v24, %v1259_v16 }
 0x157   : > { %v617_v32 = vadd.f32 %v1815_v30, %v612_v31  ;;  %v1246_v30 = vrot.slane %v1245_v21, 1  ;;  %v1292_v31 = vadd.f32 %v1291_v26, %v1290_v20  ;;  %1322 = vperm.xlu1 %1997, %v1261_v29  }
 0x159   : > { %v618_v33 = vpack.c.bf16 %v617_v32, %v617_v32  ;;  %v1273_v32 = vadd.f32 %v1272_v28, %v1271_v18  ;;  %v1293_v45 = vrot.slane %v1292_v31, 2 }
 0x15b   : > { %1891 = vmatmul.mubr.msk.bf16.vlgmr.msra.gmra.mrb[0].mxu0 %vm593_vm0, %v618_v33  ;;  %v1279_v33 = vrot.slane %v1278_v25, 2  ;;  %v1274_v47 = vrot.slane %v1273_v32, 1  ;;  %v1294_v48 = vadd.f32 %v1293_v45, %v1292_v31 }
 0x15c   : > { %1907 = vmatpush3.bf16.msra.mxu0 %v2003_v42  ;;  %v1247_v42 = vadd.f32 %v1246_v30, %v1245_v21 }
 0x15d   : > { %1908 = vmatprep.subr.bf16.mxu0 %v2004_v43  ;;  %v1280_v44 = vadd.f32 %v1279_v33, %v1278_v25  ;;  %v1275_v49 = vadd.f32 %v1274_v47, %v1273_v32  ;;  %v1295_v52 = vrot.slane %v1294_v48, 1 }
 0x15e   : > { %1312 = vperm.xlu1 %1997, %v1247_v42  }
 0x15f   : > { %v1281_v50 = vrot.slane %v1280_v44, 1  ;;  %v1296_v53 = vadd.f32 %v1295_v52, %v1294_v48 }
 0x160   : > { %1909 = vmatpush3.bf16.msra.mxu0 %v2004_v43  ;;  %v1267_v43 = vrot.slane %v1266_v27, 1 }
 0x161   : > { %1918 = vmatprep.subr.bf16.mxu0 %v2120_v9  ;;  %v1282_v51 = vadd.f32 %v1281_v50, %v1280_v44 }
 0x162   : > { %v1268_v46 = vadd.f32 %v1267_v43, %v1266_v27 }
 0x164   : > { %1327 = vperm.xlu1 %1997, %v1268_v46  }
 0x168   : > { %1332 = vperm.xlu1 %1997, %v1275_v49  }
 0x16c   : > { %1337 = vperm.xlu1 %1997, %v1282_v51  }
 0x170   : > { %1347 = vperm.xlu1 %1997, %v1296_v53  }
 0x22e   : > { %v679_v61 = vpop.f32.mrb[0].mxu0 }
 0x22f   : > { %v680_v62 = vadd.f32 %v1816_v59, %v679_v61  ;;  %v1892_v63 = vpop.f32.mrb[1].mxu0 }
 0x230   : > { %v682_v0 = vpop.f32.mrb[2].mxu0 }
 0x231   : > { %v791_v1 = vcombine.high %v680_v62, %v680_v62  ;;  %v798_v2 = vrot.slane %v680_v62, %v797_v60  ;;  %v1893_v4 = vpop.f32.mrb[3].mxu0 }
 0x233   : > { %v805_v5 = vrot.slane %v791_v1, %v797_v60  ;;  %v806_v6 = vcombine.high %v798_v2, %v798_v2  ;;  %v814_v7 = vrot.slane %v798_v2, %v797_v60 }
 0x235   : > { %v807_v8 = vcombine.high %v805_v5, %v805_v5  ;;  %v836_v10 = vcombine.high %v814_v7, %v814_v7  ;;  %v843_v11 = vrot.slane %v814_v7, %v842_v3  ;;  %v828_v12 = vrot.slane %v806_v6, %v797_v60 }
 0x236   : > { %v821_v13 = vrot.slane %v805_v5, %v797_v60 }
 0x237   : > { %v851_v14 = vrot.slane %v836_v10, %v842_v3  ;;  %v2362_v15 = vadd.f32 %v843_v11, %v2314_v35  ;;  %v838_v16 = vcombine.high %v828_v12, %v828_v12  ;;  %v847_v17 = vrot.slane %v828_v12, %v842_v3 }
 0x238   : > { %v837_v18 = vcombine.high %v821_v13, %v821_v13  ;;  %v859_v19 = vrot.slane %v821_v13, %v842_v3  ;;  %v835_v20 = vrot.slane %v807_v8, %v797_v60 }
 0x239   : > { %v2365_v21 = vadd.f32 %v2312_v34, %v851_v14  ;;  %v896_v22 = vmul.f32 0.044715, %v2362_v15  ;;  %v855_v23 = vrot.slane %v838_v16, %v842_v3  ;;  %v2369_v24 = vadd.f32 %v847_v17, %v2318_v37 }
 0x23a   : > { %v867_v25 = vrot.slane %v837_v18, %v842_v3  ;;  %v2372_v26 = vadd.f32 %v859_v19, %v2322_v39  ;;  %v839_v35 = vcombine.high %v835_v20, %v835_v20  ;;  %v863_v30 = vrot.slane %v835_v20, %v842_v3 }
 0x23b   : > { %v898_v27 = vmul.f32 0.044715, %v2365_v21  ;;  %v904_v28 = vmul.f32 %v896_v22, %v2362_v15  ;;  %v883_v29 = vadd.f32 %v2316_v36, %v855_v23  ;;  %v897_v34 = vmul.f32 0.044715, %v2369_v24 }
 0x23c   : > { %v2379_v31 = vadd.f32 %v2320_v38, %v867_v25  ;;  %v900_v37 = vmul.f32 0.044715, %v2372_v26  ;;  %v871_v32 = vrot.slane %v839_v35, %v842_v3  ;;  %v885_v48 = vadd.f32 %v863_v30, %v2326_v41 }
 0x23d   : > { %v906_v33 = vmul.f32 %v898_v27, %v2365_v21  ;;  %v912_v39 = vmul.f32 %v904_v28, %v2362_v15  ;;  %v899_v42 = vmul.f32 0.044715, %v883_v29  ;;  %v905_v43 = vmul.f32 %v897_v34, %v2369_v24 }
 0x23e   : > { %v902_v44 = vmul.f32 0.044715, %v2379_v31  ;;  %v908_v36 = vmul.f32 %v900_v37, %v2372_v26  ;;  %v887_v45 = vadd.f32 %v2324_v40, %v871_v32  ;;  %v901_v56 = vmul.f32 0.044715, %v885_v48 }
 0x23f   : > { %v914_v46 = vmul.f32 %v906_v33, %v2365_v21  ;;  %v920_v38 = vadd.f32 %v912_v39, %v2362_v15  ;;  %v907_v47 = vmul.f32 %v899_v42, %v883_v29  ;;  %v913_v49 = vmul.f32 %v905_v43, %v2369_v24 }
 0x240   : > { %v910_v50 = vmul.f32 %v902_v44, %v2379_v31  ;;  %v916_v51 = vmul.f32 %v908_v36, %v2372_v26  ;;  %v903_v52 = vmul.f32 0.044715, %v887_v45  ;;  %v909_v61 = vmul.f32 %v901_v56, %v885_v48 }
 0x241   : > { %v922_v53 = vadd.f32 %v914_v46, %v2365_v21  ;;  %v928_v54 = vmul.f32 0.7978846, %v920_v38  ;;  %v915_v55 = vmul.f32 %v907_v47, %v883_v29  ;;  %v921_v40 = vadd.f32 %v913_v49, %v2369_v24 }
 0x242   : > { %v918_v57 = vmul.f32 %v910_v50, %v2379_v31  ;;  %v924_v58 = vadd.f32 %v916_v51, %v2372_v26  ;;  %v911_v59 = vmul.f32 %v903_v52, %v887_v45  ;;  %v917_v3 = vmul.f32 %v909_v61, %v885_v48  ;;  %v2421_v52 = vpop.permute.xlu1 %1138 }
 0x243   : > { %v930_v41 = vmul.f32 0.7978846, %v922_v53  ;;  %2019 = vtanh.f32 %v928_v54  ;;  %v923_v60 = vadd.f32 %v915_v55, %v883_v29  ;;  %v929_v62 = vmul.f32 0.7978846, %v921_v40 }
 0x244   : > { %v926_v63 = vadd.f32 %v918_v57, %v2379_v31  ;;  %v919_v0 = vmul.f32 %v911_v59, %v887_v45  ;;  %v932_v2 = vmul.f32 0.7978846, %v924_v58  ;;  %v925_v6 = vadd.f32 %v917_v3, %v885_v48 }
 0x245   : > { %2021 = vtanh.f32 %v930_v41  ;;  %v931_v1 = vmul.f32 0.7978846, %v923_v60  ;;  %v888_v17 = vmul.f32 0.5, %v2362_v15  ;;  %v889_v18 = vmul.f32 0.5, %v2369_v24 }
 0x246   : > { %2023 = vtanh.f32 %v929_v62  ;;  %v934_v4 = vmul.f32 0.7978846, %v926_v63  ;;  %v927_v5 = vadd.f32 %v919_v0, %v887_v45  ;;  %v933_v8 = vmul.f32 0.7978846, %v925_v6  ;;  %v2437_v0 = vpop.permute.xlu1 %1143 }
 0x247   : > { %2025 = vtanh.f32 %v931_v1  ;;  %v890_v22 = vmul.f32 0.5, %v2365_v21  ;;  %v891_v23 = vmul.f32 0.5, %v883_v29  ;;  %v894_v15 = vmul.f32 0.5, %v2379_v31  ;;  %v2006_v31 = vld [vmem:[%s2638_s9 + $0x8] sm:$0xff]  }
 0x248   : > { %2027 = vtanh.f32 %v934_v4  ;;  %v935_v7 = vmul.f32 0.7978846, %v927_v5  ;;  %v895_v43 = vmul.f32 0.5, %v887_v45  ;;  %v892_v36 = vmul.f32 0.5, %v2372_v26  ;;  %v2005_v26 = vld [vmem:[%s2638_s9] sm:$0xff]  }
 0x249   : > { %2029 = vtanh.f32 %v932_v2  ;;  %v893_v21 = vmul.f32 0.5, %v885_v48  ;;  %v1826_v45 = vld [vmem:[%s2637_s8] ss:$0 sm:$0xff] }
 0x24a   : > { %2031 = vtanh.f32 %v935_v7 }
 0x24b   : > { %2033 = vtanh.f32 %v933_v8 }
 0x24d   : > { %v2020_v10 = vpop.eup %2019 }
 0x24e   : > { %v944_v12 = vadd.f32 1.0, %v2020_v10 }
 0x24f   : > { %v2022_v11 = vpop.eup %2021 }
 0x250   : > { %v2024_v13 = vpop.eup %2023  ;;  %v946_v14 = vadd.f32 1.0, %v2022_v11  ;;  %v952_v27 = vmul.f32 %v944_v12, %v888_v17 }
 0x251   : > { %v2026_v16 = vpop.eup %2025  ;;  %v945_v19 = vadd.f32 1.0, %v2024_v13 }
 0x252   : > { %v2028_v20 = vpop.eup %2027  ;;  %v947_v25 = vadd.f32 1.0, %v2026_v16  ;;  %v954_v37 = vmul.f32 %v946_v14, %v890_v22 }
 0x253   : > { %v2030_v35 = vpop.eup %2029  ;;  %v953_v28 = vmul.f32 %v945_v19, %v889_v18  ;;  %v950_v30 = vadd.f32 1.0, %v2028_v20 }
 0x254   : > { %v2032_v34 = vpop.eup %2031  ;;  %v955_v32 = vmul.f32 %v947_v25, %v891_v23  ;;  %v948_v33 = vadd.f32 1.0, %v2030_v35  ;;  %v1154_v25 = vpop.permute.xlu1 %1153 }
 0x255   : > { %v2034_v39 = vpop.eup %2033  ;;  %v960_v42 = vpack.c.bf16 %v953_v28, %v952_v27  ;;  %v951_v24 = vadd.f32 1.0, %v2032_v34  ;;  %v958_v46 = vmul.f32 %v950_v30, %v894_v15 }
 0x256   : > { %v961_v44 = vpack.c.bf16 %v955_v32, %v954_v37  ;;  %v949_v29 = vadd.f32 1.0, %v2034_v39  ;;  %v956_v47 = vmul.f32 %v948_v33, %v892_v36 }
 0x257   : > { %1910 = vmatprep.mubr.msk.bf16.mxu0 %vm593_vm0, %v960_v42  ;;  %v959_v38 = vmul.f32 %v951_v24, %v895_v43 }
 0x258   : > { %1911 = vmatmul.mubr.msk.bf16.vlgmr.msra.gmra.mrb[4].mxu0 %vm593_vm0, %v961_v44  ;;  %v957_v49 = vmul.f32 %v949_v29, %v893_v21  ;;  %v2470_v21 = vpop.permute.xlu1 %1158 }
 0x259   : > { %v963_v50 = vpack.c.bf16 %v959_v38, %v958_v46  ;;  %1919 = vmatpush3.bf16.msra.mxu0 %v2005_v26 }
 0x25a   : > { %v962_v51 = vpack.c.bf16 %v957_v49, %v956_v47  ;;  %1920 = vmatprep.subr.bf16.mxu0 %v2120_v9 }
 0x25c   : > { %1914 = vmatprep.mubr.msk.bf16.mxu0 %vm593_vm0, %v962_v51 }
 0x25d   : > { %1921 = vmatpush3.bf16.msra.mxu0 %v2006_v31 }
 0x25e   : > { %1926 = vmatprep.subr.bf16.mxu0 %v2120_v9 }
 0x260   : > { %1915 = vmatmul.mubr.msk.bf16.gmra.mrb[8].mxu0 %vm593_vm0, %v963_v50 }
 0x261   : > { %1922 = vmatprep.mubr.msk.bf16.mxu0 %vm2121_vm1, %v2120_v9 }
 0x32b   : > { %v1912_v48 = vpop.f32.mrb[4].mxu0 }
 0x32c   : > { %v2423_v53 = vadd.f32 %v1912_v48, %v1826_v45  ;;  %v1033_v54 = vpop.f32.mrb[5].mxu0 }
 0x32d   : > { %v2425_v55 = vadd.f32 %v1826_v45, %v1033_v54  ;;  %v1913_v56 = vpop.f32.mrb[6].mxu0 }
 0x32e   : > { %v1074_v40 = vmul.f32 0.044715, %v2423_v53  ;;  %v2428_v57 = vadd.f32 %v1913_v56, %v1826_v45  ;;  %v1036_v58 = vpop.f32.mrb[7].mxu0 }
 0x32f   : > { %v1072_v59 = vmul.f32 0.044715, %v2425_v55  ;;  %v2431_v41 = vadd.f32 %v1826_v45, %v1036_v58  ;;  %v1064_v48 = vmul.f32 0.5, %v2425_v55 }
 0x330   : > { %v1075_v60 = vmul.f32 0.044715, %v2428_v57  ;;  %v1082_v61 = vmul.f32 %v1074_v40, %v2423_v53  ;;  %v1067_v40 = vmul.f32 0.5, %v2428_v57 }
 0x331   : > { %v1080_v62 = vmul.f32 %v1072_v59, %v2425_v55  ;;  %v1073_v63 = vmul.f32 0.044715, %v2431_v41 }
 0x332   : > { %v1083_v1 = vmul.f32 %v1075_v60, %v2428_v57  ;;  %v1090_v2 = vmul.f32 %v1082_v61, %v2423_v53  ;;  %v1065_v61 = vmul.f32 0.5, %v2431_v41 }
 0x333   : > { %v1088_v3 = vmul.f32 %v1080_v62, %v2425_v55  ;;  %v1081_v4 = vmul.f32 %v1073_v63, %v2431_v41  ;;  %v1916_v5 = vpop.f32.mrb[8].mxu0 }
 0x334   : > { %v1091_v6 = vmul.f32 %v1083_v1, %v2428_v57  ;;  %v2444_v7 = vadd.f32 %v1916_v5, %v1826_v45  ;;  %v1049_v8 = vpop.f32.mrb[9].mxu0  ;;  %v1098_v19 = vadd.f32 %v1090_v2, %v2423_v53  ;;  %v1066_v1 = vmul.f32 0.5, %v2423_v53 }
 0x335   : > { %v1096_v10 = vadd.f32 %v1088_v3, %v2425_v55  ;;  %v1089_v11 = vmul.f32 %v1081_v4, %v2431_v41  ;;  %v2448_v12 = vadd.f32 %v1826_v45, %v1049_v8  ;;  %v1917_v13 = vpop.f32.mrb[10].mxu0 }
 0x336   : > { %v1099_v14 = vadd.f32 %v1091_v6, %v2428_v57  ;;  %v1078_v16 = vmul.f32 0.044715, %v2444_v7  ;;  %v2452_v17 = vadd.f32 %v1917_v13, %v1826_v45  ;;  %v1052_v18 = vpop.f32.mrb[11].mxu0  ;;  %v1106_v39 = vmul.f32 0.7978846, %v1098_v19  ;;  %v1149_v13 = vpop.permute.xlu0 %1148 }
 0x337   : > { %v1104_v20 = vmul.f32 0.7978846, %v1096_v10  ;;  %v1097_v22 = vadd.f32 %v1089_v11, %v2431_v41  ;;  %v1076_v23 = vmul.f32 0.044715, %v2448_v12  ;;  %v2460_v37 = vadd.f32 %v1826_v45, %v1052_v18  ;;  %v2475_v45 = vpop.permute.xlu1 %1163 }
 0x338   : > { %v1107_v35 = vmul.f32 0.7978846, %v1099_v14  ;;  %v1086_v27 = vmul.f32 %v1078_v16, %v2444_v7  ;;  %v1079_v28 = vmul.f32 0.044715, %v2452_v17  ;;  %v1070_v11 = vmul.f32 0.5, %v2444_v7 }
 0x339   : > { %2035 = vtanh.f32 %v1104_v20  ;;  %v1105_v30 = vmul.f32 0.7978846, %v1097_v22  ;;  %v1084_v34 = vmul.f32 %v1076_v23, %v2448_v12  ;;  %v1077_v15 = vmul.f32 0.044715, %v2460_v37 }
 0x33a   : > { %2037 = vtanh.f32 %v1107_v35  ;;  %v1094_v32 = vmul.f32 %v1086_v27, %v2444_v7  ;;  %v1087_v33 = vmul.f32 %v1079_v28, %v2452_v17  ;;  %v1068_v41 = vmul.f32 0.5, %v2448_v12 }
 0x33b   : > { %2039 = vtanh.f32 %v1105_v30  ;;  %v1092_v42 = vmul.f32 %v1084_v34, %v2448_v12  ;;  %v1085_v36 = vmul.f32 %v1077_v15, %v2460_v37  ;;  %v1169_v8 = vpop.permute.xlu1 %1168  ;;  %v1069_v30 = vmul.f32 0.5, %v2460_v37 }
 0x33c   : > { %v1102_v43 = vadd.f32 %v1094_v32, %v2444_v7  ;;  %v1095_v24 = vmul.f32 %v1087_v33, %v2452_v17  ;;  %2041 = vtanh.f32 %v1106_v39 }
 0x33d   : > { %v1100_v44 = vadd.f32 %v1092_v42, %v2448_v12  ;;  %v1093_v47 = vmul.f32 %v1085_v36, %v2460_v37 }
 0x33e   : > { %v1110_v29 = vmul.f32 0.7978846, %v1102_v43  ;;  %v1103_v46 = vadd.f32 %v1095_v24, %v2452_v17 }
 0x33f   : > { %v1108_v38 = vmul.f32 0.7978846, %v1100_v44  ;;  %v1101_v50 = vadd.f32 %v1093_v47, %v2460_v37  ;;  %v1174_v43 = vpop.permute.xlu1 %1173 }
 0x340   : > { %2043 = vtanh.f32 %v1110_v29  ;;  %v1111_v49 = vmul.f32 0.7978846, %v1103_v46 }
 0x341   : > { %2045 = vtanh.f32 %v1108_v38  ;;  %v1109_v26 = vmul.f32 0.7978846, %v1101_v50 }
 0x342   : > { %2047 = vtanh.f32 %v1111_v49 }
 0x343   : > { %v2036_v51 = vpop.eup %2035  ;;  %2049 = vtanh.f32 %v1109_v26 }
 0x344   : > { %v2038_v31 = vpop.eup %2037  ;;  %v1120_v54 = vadd.f32 1.0, %v2036_v51 }
 0x345   : > { %v2040_v56 = vpop.eup %2039  ;;  %v1123_v58 = vadd.f32 1.0, %v2038_v31 }
 0x346   : > { %v2042_v59 = vpop.eup %2041  ;;  %v1128_v60 = vmul.f32 %v1120_v54, %v1064_v48  ;;  %v1121_v62 = vadd.f32 1.0, %v2040_v56 }
 0x347   : > { %v1131_v63 = vmul.f32 %v1123_v58, %v1067_v40  ;;  %v1122_v2 = vadd.f32 1.0, %v2042_v59 }
 0x348   : > { %v1176_v3 = vmul.f32 %v2421_v52, %v1128_v60  ;;  %v1129_v4 = vmul.f32 %v1121_v62, %v1065_v61 }
 0x349   : > { %v1179_v5 = vmul.f32 %v1154_v25, %v1131_v63  ;;  %v1130_v55 = vmul.f32 %v1122_v2, %v1066_v1  ;;  %v1071_v25 = vmul.f32 0.5, %v2452_v17 }
 0x34a   : > { %v2044_v6 = vpop.eup %2043  ;;  %v1184_v57 = vsel %vm593_vm0, %v1176_v3, 0.0  ;;  %v1177_v10 = vmul.f32 %v2437_v0, %v1129_v4 }
 0x34b   : > { %v2046_v14 = vpop.eup %2045  ;;  %v1185_v16 = vrot.slane %v1184_v57, 4  ;;  %v1205_v53 = vsel %vm593_vm0, %v1179_v5, 0.0  ;;  %v1126_v18 = vadd.f32 1.0, %v2044_v6  ;;  %v1178_v52 = vmul.f32 %v1149_v13, %v1130_v55 }
 0x34c   : > { %v2048_v19 = vpop.eup %2047  ;;  %v1206_v20 = vrot.slane %v1205_v53, 4  ;;  %v1191_v22 = vsel %vm593_vm0, %v1177_v10, 0.0  ;;  %v1124_v23 = vadd.f32 1.0, %v2046_v14 }
 0x34d   : > { %v1186_v35 = vadd.f32 %v1185_v16, %v1184_v57  ;;  %v1192_v0 = vrot.slane %v1191_v22, 4  ;;  %v1134_v27 = vmul.f32 %v1126_v18, %v1070_v11  ;;  %v1127_v7 = vadd.f32 1.0, %v2048_v19  ;;  %v2050_v32 = vpop.eup %2049 }
 0x34e   : > { %v1207_v28 = vadd.f32 %v1206_v20, %v1205_v53  ;;  %v1132_v12 = vmul.f32 %v1124_v23, %v1068_v41  ;;  %v1198_v34 = vsel %vm593_vm0, %v1178_v52, 0.0  ;;  %v1125_v17 = vadd.f32 1.0, %v2050_v32 }
 0x34f   : > { %v1187_v33 = vrot.slane %v1186_v35, 2  ;;  %v1193_v39 = vadd.f32 %v1192_v0, %v1191_v22  ;;  %v1182_v42 = vmul.f32 %v1169_v8, %v1134_v27  ;;  %v1135_v15 = vmul.f32 %v1127_v7, %v1071_v25 }
 0x350   : > { %v1208_v24 = vrot.slane %v1207_v28, 2  ;;  %v1180_v44 = vmul.f32 %v2470_v21, %v1132_v12  ;;  %v1199_v36 = vrot.slane %v1198_v34, 4  ;;  %v1133_v50 = vmul.f32 %v1125_v17, %v1069_v30 }
 0x351   : > { %v1188_v29 = vadd.f32 %v1187_v33, %v1186_v35  ;;  %v1194_v46 = vrot.slane %v1193_v39, 2  ;;  %v1226_v38 = vsel %vm593_vm0, %v1182_v42, 0.0  ;;  %v1183_v47 = vmul.f32 %v1174_v43, %v1135_v15 }
 0x352   : > { %v1227_v49 = vrot.slane %v1226_v38, 4  ;;  %v1212_v37 = vsel %vm593_vm0, %v1180_v44, 0.0  ;;  %v1200_v51 = vadd.f32 %v1199_v36, %v1198_v34  ;;  %v1181_v21 = vmul.f32 %v2475_v45, %v1133_v50 }
 0x353   : > { %v1195_v26 = vadd.f32 %v1194_v46, %v1193_v39  ;;  %v1213_v31 = vrot.slane %v1212_v37, 4  ;;  %v1233_v48 = vsel %vm593_vm0, %v1183_v47, 0.0  ;;  %v1189_v54 = vrot.slane %v1188_v29, 1 }
 0x354   : > { %v1228_v56 = vadd.f32 %v1227_v49, %v1226_v38  ;;  %v1234_v40 = vrot.slane %v1233_v48, 4  ;;  %v1201_v58 = vrot.slane %v1200_v51, 2  ;;  %v1209_v62 = vadd.f32 %v1208_v24, %v1207_v28 }
 0x355   : > { %v1214_v59 = vadd.f32 %v1213_v31, %v1212_v37  ;;  %v1190_v60 = vadd.f32 %v1189_v54, %v1188_v29  ;;  %v1196_v61 = vrot.slane %v1195_v26, 1  ;;  %v1219_v1 = vsel %vm593_vm0, %v1181_v21, 0.0 }
 0x356   : > { %v1235_v63 = vadd.f32 %v1234_v40, %v1233_v48  ;;  %v1202_v2 = vadd.f32 %v1201_v58, %v1200_v51  ;;  %v1229_v3 = vrot.slane %v1228_v56, 2  ;;  %v1220_v4 = vrot.slane %v1219_v1, 4  ;;  %v1318_v51 = vpop.permute.xlu1 %1317  ;;  %v1833_v48 = vld [vmem:[%s2639_s10] ss:$0 sm:$0xff] }
 0x357   : > { %v1197_v5 = vadd.f32 %v1196_v61, %v1195_v26  ;;  %v1297_v55 = vpack.c.bf16 %v1190_v60, %v1190_v60  ;;  %v1210_v6 = vrot.slane %v1209_v62, 1  ;;  %v1215_v10 = vrot.slane %v1214_v59, 2 }
 0x358   : > { %v1236_v8 = vrot.slane %v1235_v63, 2  ;;  %v1203_v57 = vrot.slane %v1202_v2, 1  ;;  %v1230_v11 = vadd.f32 %v1229_v3, %v1228_v56  ;;  %v1221_v13 = vadd.f32 %v1220_v4, %v1219_v1 }
 0x359   : > { %v1298_v41 = vpack.c.bf16 %v1197_v5, %v1197_v5  ;;  %v1211_v45 = vadd.f32 %v1210_v6, %v1209_v62  ;;  %v1216_v16 = vadd.f32 %v1215_v10, %v1214_v59  ;;  %v1372_v52 = vunpack.c.l.b16 %v1297_v55  ;;  %v1343_v5 = vpop.permute.xlu0 %1342 }
 0x35a   : > { %v1204_v14 = vadd.f32 %v1203_v57, %v1202_v2  ;;  %v1231_v53 = vrot.slane %v1230_v11, 1  ;;  %v1237_v18 = vadd.f32 %v1236_v8, %v1235_v63  ;;  %v1222_v20 = vrot.slane %v1221_v13, 2  ;;  %v1323_v26 = vpop.permute.xlu1 %1322 }
 0x35b   : > { %v1373_v19 = vunpack.c.l.b16 %v1298_v41  ;;  %v1300_v22 = vpack.c.bf16 %v1211_v45, %v1211_v45  ;;  %v1217_v25 = vrot.slane %v1216_v16, 1  ;;  %v1357_v56 = vmul.f32 %v1833_v48, %v1318_v51  ;;  %v2015_v51 = vld [vmem:[%s2643_s14 + $0x30] sm:$0xff]  }
 0x35c   : > { %v1299_v23 = vpack.c.bf16 %v1204_v14, %v1204_v14  ;;  %v1238_v35 = vrot.slane %v1237_v18, 1  ;;  %v1223_v27 = vadd.f32 %v1222_v20, %v1221_v13  ;;  %v1232_v12 = vadd.f32 %v1231_v53, %v1230_v11 }
 0x35d   : > { %v1381_v0 = vsel %vm1380_vm3, %v1373_v19, %v1372_v52  ;;  %v1218_v28 = vadd.f32 %v1217_v25, %v1216_v16  ;;  %v1375_v32 = vunpack.c.l.b16 %v1300_v22  ;;  %v1358_v40 = vmul.f32 %v1833_v48, %v1323_v26  ;;  %v2055_v22 = vld [vmem:[%s2268_s29] sm:$0xff]  ;;  %v2016_v26 = vld [vmem:[%s2643_s14 + $0x38] sm:$0xff]  }
 0x35e   : > { %v1374_v7 = vunpack.c.l.b16 %v1299_v23  ;;  %v1224_v30 = vrot.slane %v1223_v27, 1  ;;  %v1239_v34 = vadd.f32 %v1238_v35, %v1237_v18  ;;  %v1303_v43 = vpack.c.bf16 %v1232_v12, %v1232_v12  ;;  %v1313_v31 = vpop.permute.xlu1 %1312 }
 0x35f   : > { %v1301_v39 = vpack.c.bf16 %v1218_v28, %v1218_v28  ;;  %v1415_v58 = vrot.slane %v1357_v56, 7  ;;  %v1356_v59 = vmul.f32 %v1833_v48, %v1313_v31  ;;  %v1417_v61 = vrot.slane %v1358_v40, 6  ;;  %v1839_v31 = vld [vmem:[%s2642_s13] ss:$0 sm:$0xff] }
 0x360   : > { %v1383_v33 = vsel %vm1382_vm4, %v1374_v7, %v1381_v0  ;;  %v1225_v42 = vadd.f32 %v1224_v30, %v1223_v27  ;;  %v1304_v17 = vpack.c.bf16 %v1239_v34, %v1239_v34  ;;  %v1378_v46 = vunpack.c.l.b16 %v1303_v43  ;;  %v588_v0 = vld [vmem:[%s577_s20] sm:$0xff]  ;;  %s1708_s20 = sshll.u32 %s557_s27, 4  ;;  %s2588_s20 = int_to_ptr.vmem [resolvable:$true] %s1708_s20 }
 0x361   : > { %v1385_v15 = vsel %vm1384_vm5, %v1375_v32, %v1383_v33  ;;  %v1376_v24 = vunpack.c.l.b16 %v1301_v39  ;;  %v1416_v62 = vsel %vm1380_vm3, %v1415_v58, %v1356_v59  ;;  %v1362_v8 = vmul.f32 %v1833_v48, %v1343_v5  ;;  %v2007_v34 = vld [vmem:[%s2641_s12] sm:$0xff]   ;;  %v2008_v32 = vld [vmem:[%s2641_s12 + $0x8] sm:$0xff]   ;;  %s2056_s25 = scalar_lea.vmem %s2588_s20, 128  ;;  %p2063_p1 = scmp.lt.s32.totalorder %s2588_s20, %s2061_s1 }
 0x362   : > { %v1302_v44 = vpack.c.bf16 %v1225_v42, %v1225_v42  ;;  %v1379_v38 = vunpack.c.l.b16 %v1304_v17  ;;  %v1328_v54 = vpop.permute.xlu1 %1327  ;;  %v1418_v3 = vsel %vm1382_vm4, %v1417_v61, %v1416_v62  ;;  %v2009_v33 = vld [vmem:[%s2643_s14] sm:$0xff]   ;;  %p2057_p12 = scmp.ne.s32.totalorder %s2588_s20, %s2056_s25  ;;  %p2064_p2 = scmp.lt.s32.totalorder %s2062_s4, %s2056_s25 }
 0x363   : > { %v1387_v36 = vsel %vm1386_vm6, %v1376_v24, %v1385_v15  ;;  %v1359_v60 = vmul.f32 %v1833_v48, %v1328_v54  ;;  %v1425_v45 = vrot.slane %v1362_v8, 2  ;;  %1935 = vmatpush3.bf16.msra.mxu1 %v2009_v33  ;;  %v1837_v24 = vld [vmem:[%s2640_s11 + $0x2] ss:$0 sm:$0xff]  ;;  %v1838_v17 = vld [vmem:[%s2640_s11 + $0x3] ss:$0 sm:$0xff] }
 0x364   : > { %v1377_v29 = vunpack.c.l.b16 %v1302_v44  ;;  %1936 = vmatprep.subr.bf16.mxu1 %v2120_v9  ;;  %v1851_v5 = vld [vmem:[%s2644_s15] ss:$0 sm:$0xff]  ;;  %p2058_p13 = pnand %p2057_p12, %p2248_p5  ;;  %p2065_p3 = por %p2064_p2, %p2063_p1 }
 0x365   : > { %v1419_v2 = vrot.slane %v1359_v60, 5 }
 0x366   : > { %v1389_v47 = vsel %vm1388_vm7, %v1377_v29, %v1387_v36  ;;  %v1333_v21 = vpop.permute.xlu1 %1332  ;;  %p2059_p0 = pneg %p2058_p13 }
 0x367   : > { %v1391_v49 = vsel %vm1390_vm8, %v1378_v46, %v1389_v47  ;;  %v1360_v63 = vmul.f32 %v1833_v48, %v1333_v21  ;;  %v1420_v6 = vsel %vm1384_vm5, %v1419_v2, %v1418_v3  ;;  %v2011_v47 = vld [vmem:[%s2643_s14 + $0x10] sm:$0xff]  }
 0x368   : > { %v1393_v37 = vsel %vm1392_vm9, %v1379_v38, %v1391_v49  ;;  %v2010_v38 = vld [vmem:[%s2643_s14 + $0x8] sm:$0xff]   ;;  %v2012_v49 = vld [vmem:[%s2643_s14 + $0x18] sm:$0xff]   ;;  %p2066_p4 = pnand %p2065_p3, %p2059_p0 }
 0x369   : > { %v1394_v50 = vpack.c.b16 %v1393_v37, %v1393_v37  ;;  %v1421_v55 = vrot.slane %v1360_v63, 4  ;;  %1937 = vmatpush3.bf16.msra.mxu1 %v2010_v38  ;;  %v2013_v37 = vld [vmem:[%s2643_s14 + $0x20] sm:$0xff]  }
 0x36a   : > { %v1338_v1 = vpop.permute.xlu1 %1337  ;;  %1938 = vmatprep.subr.bf16.mxu1 %v2120_v9 }
 0x36b   : > { %1923 = vmatmul.mubr.msk.bf16.vlgmr.msra.gmra.mrb[12].mxu0 %vm593_vm0, %v1394_v50  ;;  %v1361_v4 = vmul.f32 %v1833_v48, %v1338_v1  ;;  %v1422_v11 = vsel %vm1386_vm6, %v1421_v55, %v1420_v6  ;;  %v2014_v50 = vld [vmem:[%s2643_s14 + $0x28] sm:$0xff]  }
 0x36c   : > { %1930 = vmatprep.mubr.msk.bf16.mxu0 %vm2121_vm1, %v2120_v9  ;;  %1927 = vmatpush3.bf16.msra.mxu0 %v2007_v34 }
 0x36d   : > { %v1423_v10 = vrot.slane %v1361_v4, 3  ;;  %1928 = vmatprep.subr.bf16.mxu0 %v2120_v9  ;;  %1939 = vmatpush3.bf16.msra.mxu1 %v2011_v47 }
 0x36e   : > { %v1348_v57 = vpop.permute.xlu1 %1347  ;;  %1940 = vmatprep.subr.bf16.mxu1 %v2120_v9 }
 0x36f   : > { %v1363_v41 = vmul.f32 %v1833_v48, %v1348_v57  ;;  %v1424_v13 = vsel %vm1388_vm7, %v1423_v10, %v1422_v11 }
 0x370   : > { %v1426_v16 = vsel %vm1390_vm8, %v1425_v45, %v1424_v13  ;;  %1929 = vmatpush3.bf16.msra.mxu0 %v2008_v32 }
 0x371   : > { %v1427_v14 = vrot.slane %v1363_v41, 1  ;;  %1941 = vmatpush3.bf16.msra.mxu1 %v2012_v49 }
 0x372   : > { %1942 = vmatprep.subr.bf16.mxu1 %v2120_v9 }
 0x373   : > { %v1428_v53 = vsel %vm1392_vm9, %v1427_v14, %v1426_v16 }
 0x375   : > { %1943 = vmatpush3.bf16.msra.mxu1 %v2013_v37 }
 0x376   : > { %1944 = vmatprep.subr.bf16.mxu1 %v2120_v9 }
 0x379   : > { %1945 = vmatpush3.bf16.msra.mxu1 %v2014_v50 }
 0x37a   : > { %1946 = vmatprep.subr.bf16.mxu1 %v2120_v9 }
 0x37d   : > { %1947 = vmatpush3.bf16.msra.mxu1 %v2015_v51 }
 0x37e   : > { %1948 = vmatprep.subr.bf16.mxu1 %v2120_v9 }
 0x381   : > { %1949 = vmatpush3.bf16.msra.mxu1 %v2016_v26 }
 0x43e   : > { %v1467_v18 = vpop.f32.mrb[12].mxu0 }
 0x43f   : > { %v1468_v52 = vadd.f32 %v1467_v18, %v1428_v53  ;;  %v1924_v19 = vpop.f32.mrb[13].mxu0 }
 0x440   : > { %v1470_v20 = vpop.f32.mrb[14].mxu0 }
 0x441   : > { %v2518_v23 = vadd.f32 %v2055_v22, %v1468_v52  ;;  %v1925_v25 = vpop.f32.mrb[15].mxu0 }
 0x443   : > { %v1474_v35 = vsel %vm593_vm0, %v2518_v23, 0.0 }
 0x444   : > { %1475 = vadd.xlane.f32.xlu0 %v1474_v35 }
 0x45a   : > { %1689 = vperm.xlu0 %1998, %v588_v0  }
 0x4d1   : > { %v1476_v27 = vpop.xlane.xlu0 %1475 }
 0x4d2   : > { %v1477_v7 = vmul.f32 0.03125, %v1476_v27 }
 0x4d4   : > { %v1478_v28 = vsub.f32 %v2518_v23, %v1477_v7 }
 0x4d6   : > { %v1479_v12 = vmul.f32 %v1478_v28, %v1478_v28 }
 0x4d8   : > { %v1480_v30 = vsel %vm593_vm0, %v1479_v12, 0.0 }
 0x4d9   : > { %1481 = vadd.xlane.f32.xlu1 %v1480_v30  ;;  %v1690_v11 = vpop.permute.xlu0 %1689 }
 0x566   : > { %v1482_v39 = vpop.xlane.xlu1 %1481 }
 0x567   : > { %v1483_v42 = vmul.f32 0.03125, %v1482_v39 }
 0x569   : > { %v1484_v15 = vadd.f32 1e-05, %v1483_v42 }
 0x56b   : > { %2051 = vrsqrt.f32 %v1484_v15 }
 0x575   : > { %v2052_v43 = vpop.eup %2051 }
 0x576   : > { %v1486_v44 = vmul.f32 %v2052_v43, %v1478_v28 }
 0x578   : > { %v1491_v36 = vmul.f32 %v1837_v24, %v1486_v44 }
 0x57a   : > { %v1496_v29 = vadd.f32 %v1838_v17, %v1491_v36 }
 0x57c   : > { %v1497_v46 = vpack.c.bf16 %v1496_v29, %v1496_v29 }
 0x57e   : > { %1931 = vmatmul.mubr.msk.bf16.vlgmr.msra.gmra.mrb[16].mxu0 %vm593_vm0, %v1497_v46 }
 0x651   : > { %v1558_v48 = vpop.f32.mrb[16].mxu0 }
 0x652   : > { %v1559_v54 = vadd.f32 %v1839_v31, %v1558_v48  ;;  %v1932_v56 = vpop.f32.mrb[17].mxu0 }
 0x653   : > { %v1561_v40 = vpop.f32.mrb[18].mxu0 }
 0x654   : > { %v1565_v21 = vmul.f32 0.044715, %v1559_v54  ;;  %v1933_v58 = vpop.f32.mrb[19].mxu0  ;;  %v1564_v9 = vmul.f32 0.5, %v1559_v54 }
 0x656   : > { %v1566_v59 = vmul.f32 %v1565_v21, %v1559_v54 }
 0x658   : > { %v1567_v60 = vmul.f32 %v1566_v59, %v1559_v54 }
 0x65a   : > { %v1568_v61 = vadd.f32 %v1567_v60, %v1559_v54 }
 0x65c   : > { %v1569_v62 = vmul.f32 0.7978846, %v1568_v61 }
 0x65e   : > { %2053 = vtanh.f32 %v1569_v62 }
 0x668   : > { %v2054_v63 = vpop.eup %2053 }
 0x669   : > { %v1571_v1 = vadd.f32 1.0, %v2054_v63 }
 0x66b   : > { %v1572_v2 = vmul.f32 %v1571_v1, %v1564_v9 }
 0x66d   : > { %v1573_v3 = vpack.c.bf16 %v1572_v2, %v1572_v2 }
 0x66f   : > { %1951 = vmatmul.mubr.bf16.vlgmr.msra.gmra.mrb[8].mxu1 %v1573_v3 }
 0x742   : > { %v1672_v4 = vpop.f32.mrb[8].mxu1 }
 0x743   : > { %v1678_v55 = vadd.f32 %v1672_v4, %v2518_v23  ;;  %v1952_v6 = vpop.f32.mrb[9].mxu1 }
 0x744   : > { %v1675_v8 = vpop.f32.mrb[10].mxu1 }
 0x745   : > { %v1686_v57 = vadd.f32 %v1851_v5, %v1678_v55  ;;  %v1953_v10 = vpop.f32.mrb[11].mxu1 }
 0x747   : > { %v1692_v41 = vmul.f32 %v1690_v11, %v1686_v57 }
 0x749   : > { %1693 = vst.msk [vmem:[%s557_s27] sm:$0xff] %vm593_vm0, %v1692_v41 }
 0x74a   : > { %2069 = shalt.err (!%p2066_p4)
}
 0x74b   : > { %s2070_s28 = scalar_lea.hbm %s2586_s18, 128  ;;  %s2074_s29 = scalar_lea.hbm %s2645_s16, 256 }
 0x74c   : > { %p2071_p7 = scmp.ne.s32.totalorder %s2586_s18, %s2070_s28  ;;  %p2075_p10 = scmp.lt.u32.totalorder %s2586_s18, %s2645_s16 }
 0x74d   : > { %p2076_p11 = scmp.lt.u32.totalorder %s2074_s29, %s2070_s28  ;;  %p2078_p13 = scmp.lt.u32.totalorder %s2070_s28, %s2586_s18 }
 0x74e   : > { %p2072_p8 = pnand %p2071_p7, %p2248_p5 }
 0x74f   : > { %p2077_p12 = por %p2076_p11, %p2075_p10 }
 0x750   : > { %p2073_p9 = pneg %p2072_p8 }
 0x751   : > { %p2079_p0 = por %p2078_p13, %p2077_p12 }
 0x753   : > { %p2080_p1 = pnand %p2079_p0, %p2073_p9 }
 0x755   : > { %2083 = shalt.err (!%p2080_p1)
}
 0x756   : > { %1954 = dma.vmem_to_hbm [thread:$0]  (%p2248_p5), %s2588_s20, 128, %s2586_s18, %s1695_s26  }
 0x757 PF: > { %p1960_p2 = scmp.ge.s32.totalorder %s2118_s24, 2  ;;  %s1720_s25 = sand.u32 1, %s2106_s21  }
 0x758   : > { %s1721_s1 = scalar_lea.sflag [#allocation3], %s1720_s25 }
 0x759   : > { %p1957_p3 = pnand %p1960_p2, %p2252_p6 }
 0x75b   : > { %2101 = dma.done.wait (!%p1957_p3), %s1721_s1, 128  }
 0x75c   : > { %2103 = vsyncadd (!%p1957_p3), %s1721_s1, 4294967168  ;;  %s2662_s24 = sld [smem:[#allocation6_spill]]  ;;  %s2663_s4 = sld [smem:[#allocation5_spill]] }
 0x75d   : > { %s2664_s23 = sld [smem:[#allocation7_spill]]  ;;  %s2665_s21 = smov %s2110_s22 }
 0x762   : > { %p26_p4 = scmp.ge.s32.totalorder %s2662_s24, 4   ;;  %s2666_s22 = smov %s2663_s4 }
 0x764   :  { %28 = sbr.rel (!%p26_p4) target bundleno = 7 (0x7), region = 128 }
 0x76b   :  { %1726 = vsyncpa [#allocation3], 1 }
 0x76c   :  { %1728 = vsyncpa [#allocation3 + $0x1], 1 }

</bundles_post_ra>
